<compile_context>
chip_gen: v7x
topology: tpu7x:2x2x1
jax: 0.10.0
libtpu: 0.0.40
codegen_flags: <defaults>
</compile_context>

<pallas_src>
import numpy as np
import jax
import jax.numpy as jnp
from jax.experimental import pallas as pl
from jax.experimental.pallas import tpu as pltpu

# Model hyper-parameters (small, consistent with the module).
HEADS = 4
D_MODEL = 32
D_HEAD = D_MODEL // HEADS
TRG_LEN = 8
SRC_LEN = 8
BATCH = 2
BN_EPS = 1e-5


# ------------------------------------------------------------------ kernel ---
def _softmax_rows(s):
    s = s - jnp.max(s, axis=-1, keepdims=True)
    e = jnp.exp(s)
    return e * pl.reciprocal(jnp.sum(e, axis=-1, keepdims=True), approx=True)


def _mha(xq, xkv, mask, wqkv, bqkv, wo, bo, *, self_attn):
    """Shared multi-head attention on flattened activations.

    xq:  (B*Lq, D) queries
    xkv: (B*Lk, D) keys/values (== xq for self-attention)
    wqkv: (D, 3D) fused [Wq*scale | Wk | Wv];  bqkv: (1, 3D)
    wo:   (D, D);  bo: (1, D)
    """
    D = D_MODEL
    if self_attn:
        # One fused projection for Q, K and V.
        qkv = jnp.dot(xq, wqkv, preferred_element_type=jnp.float32) + bqkv
        q, k, v = qkv[:, :D], qkv[:, D:2 * D], qkv[:, 2 * D:]
    else:
        q = jnp.dot(xq, wqkv[:, :D], preferred_element_type=jnp.float32) + bqkv[:, :D]
        kv = jnp.dot(xkv, wqkv[:, D:], preferred_element_type=jnp.float32) + bqkv[:, D:]
        k, v = kv[:, :D], kv[:, D:]

    lq = xq.shape[0] // BATCH
    lk = xkv.shape[0] // BATCH

    ctx_rows = []
    for b in range(BATCH):          # static unroll, B = 2
        qb = q[b * lq:(b + 1) * lq, :]
        kb = k[b * lk:(b + 1) * lk, :]
        vb = v[b * lk:(b + 1) * lk, :]
        head_outs = []
        for h in range(HEADS):      # static unroll, H = 4
            lo, hi = h * D_HEAD, (h + 1) * D_HEAD
            qh, kh, vh = qb[:, lo:hi], kb[:, lo:hi], vb[:, lo:hi]
            # scores = (q/sqrt(dh)) @ k^T   (scale already folded into Wq)
            s = jax.lax.dot_general(qh, kh, (((1,), (1,)), ((), ())),
                                    preferred_element_type=jnp.float32)
            if mask is not None:
                s = s + mask
            p = _softmax_rows(s)
            head_outs.append(jnp.dot(p, vh, preferred_element_type=jnp.float32))
        ctx_rows.append(jnp.concatenate(head_outs, axis=-1))      # (lq, D)
    ctx = jnp.concatenate(ctx_rows, axis=0)                        # (B*lq, D)
    # Single fused output projection for all heads / all batch rows.
    return jnp.dot(ctx, wo, preferred_element_type=jnp.float32) + bo


def decoder_kernel(x_ref, keys_ref, mask_ref,
                   wqkv_ref, bqkv_ref, wo_ref, bo_ref,
                   w1_ref, b1_ref, w2_ref, b2_ref,
                   gam_ref, bet_ref,
                   out_ref):
    x = x_ref[...]        # (B*L, D)
    keys = keys_ref[...]  # (B*S, D)
    mask = mask_ref[...]  # (L, L)

    wqkv, bqkv = wqkv_ref[...], bqkv_ref[...]
    wo, bo = wo_ref[...], bo_ref[...]
    w1, b1 = w1_ref[...], b1_ref[...]
    w2, b2 = w2_ref[...], b2_ref[...]

    # --- block 1: masked self-attention + residual + BatchNorm1d (eval) ------
    a1 = _mha(x, x, mask, wqkv, bqkv, wo, bo, self_attn=True)
    x1 = (a1 + x) * gam_ref[0] + bet_ref[0]

    # --- block 2: cross-attention with the SAME attention weights ------------
    a2 = _mha(x1, keys, None, wqkv, bqkv, wo, bo, self_attn=False)
    x2 = (a2 + x1) * gam_ref[1] + bet_ref[1]

    # --- block 3: FFNN (residual inside) + outer residual + BatchNorm1d ------
    h = jnp.maximum(
        jnp.dot(x2, w1, preferred_element_type=jnp.float32) + b1, 0.0)
    f = jnp.dot(h, w2, preferred_element_type=jnp.float32) + b2 + x2
    x3 = (f + x2) * gam_ref[2] + bet_ref[2]

    out_ref[...] = x3


# ----------------------------------------------------------------- wrapper ---
def decoder_pallas(x, keys, mask, p, gam, bet):
    B, L, D = x.shape
    S = keys.shape[1]
    scale = jnp.float32(1.0 / np.sqrt(D_HEAD))

    # Fused QKV weights in natural (D, 3D) layout; fold 1/sqrt(d_head) into Wq/bq.
    wqkv = jnp.concatenate([p["wq"] * scale, p["wk"], p["wv"]], axis=1)   # (D, 3D)
    bqkv = jnp.concatenate([p["bq"] * scale, p["bk"], p["bv"]]).reshape(1, 3 * D)
    wo, bo = p["wo"], p["bo"].reshape(1, D)
    w1, b1 = p["w1"], p["b1"].reshape(1, 4 * D)
    w2, b2 = p["w2"], p["b2"].reshape(1, D)

    # BN (eval) affine, pre-broadcast to (3, B*L, D). Flattened rows are ordered
    # [b0: l=0..L-1, b1: l=0..L-1, ...] -> channel = row % L -> tile over batch.
    gam_full = jnp.tile(jnp.broadcast_to(gam.reshape(3, L, 1), (3, L, D)), (1, B, 1))
    bet_full = jnp.tile(jnp.broadcast_to(bet.reshape(3, L, 1), (3, L, D)), (1, B, 1))

    x2d = x.reshape(B * L, D)
    k2d = keys.reshape(B * S, D)

    args = [x2d, k2d, mask, wqkv, bqkv, wo, bo, w1, b1, w2, b2, gam_full, bet_full]

    def full_spec(a):
        n = a.ndim
        return pl.BlockSpec(a.shape, lambda i, _n=n: (0,) * _n)

    out2d = pl.pallas_call(
        decoder_kernel,
        out_shape=jax.ShapeDtypeStruct((B * L, D), jnp.float32),
        grid=(1,),
        in_specs=[full_spec(a) for a in args],
        out_specs=pl.BlockSpec((B * L, D), lambda i: (0, 0)),
        compiler_params=pltpu.CompilerParams(dimension_semantics=("arbitrary",)),
    )(*args)
    return out2d.reshape(B, L, D)


# -------------------------------------------------------- pure-JAX reference -
def _mha_ref(xq, xkv, mask, p):
    B, Lq, D = xq.shape
    Lk = xkv.shape[1]
    q = (xq @ p["wq"] + p["bq"]).reshape(B, Lq, HEADS, D_HEAD).transpose(0, 2, 1, 3)
    k = (xkv @ p["wk"] + p["bk"]).reshape(B, Lk, HEADS, D_HEAD).transpose(0, 2, 1, 3)
    v = (xkv @ p["wv"] + p["bv"]).reshape(B, Lk, HEADS, D_HEAD).transpose(0, 2, 1, 3)
    s = jnp.einsum("bhqd,bhkd->bhqk", q, k) / jnp.sqrt(jnp.float32(D_HEAD))
    if mask is not None:
        s = s + mask
    a = jax.nn.softmax(s, axis=-1)
    o = jnp.einsum("bhqk,bhkd->bhqd", a, v).transpose(0, 2, 1, 3).reshape(B, Lq, D)
    return o @ p["wo"] + p["bo"]


def decoder_ref(x, keys, mask, p, gam, bet):
    g = gam[:, None, :, None]   # (3, 1, L, 1)
    bb = bet[:, None, :, None]
    x1 = (_mha_ref(x, x, mask, p) + x) * g[0] + bb[0]
    x2 = (_mha_ref(x1, keys, None, p) + x1) * g[1] + bb[1]
    h = jax.nn.relu(x2 @ p["w1"] + p["b1"])
    f = h @ p["w2"] + p["b2"] + x2
    return (f + x2) * g[2] + bb[2]


# -------------------------------------------------------------------- setup --
def _linear_init(key, d_in, d_out):
    kw, kb = jax.random.split(key)
    bound = 1.0 / np.sqrt(d_in)
    w = jax.random.uniform(kw, (d_in, d_out), jnp.float32, -bound, bound)
    b = jax.random.uniform(kb, (d_out,), jnp.float32, -bound, bound)
    return w, b  # stored as (in, out): kernel does x @ w + b


def make_params(key):
    ks = jax.random.split(key, 6)
    p = {}
    p["wq"], p["bq"] = _linear_init(ks[0], D_MODEL, D_MODEL)
    p["wk"], p["bk"] = _linear_init(ks[1], D_MODEL, D_MODEL)
    p["wv"], p["bv"] = _linear_init(ks[2], D_MODEL, D_MODEL)
    p["wo"], p["bo"] = _linear_init(ks[3], D_MODEL, D_MODEL)
    p["w1"], p["b1"] = _linear_init(ks[4], D_MODEL, 4 * D_MODEL)
    p["w2"], p["b2"] = _linear_init(ks[5], 4 * D_MODEL, D_MODEL)
    return p


def make_bn_affine():
    # nn.BatchNorm1d(trg_len) default init: weight=1, bias=0, rm=0, rv=1 (eval mode).
    weight = jnp.ones((3, TRG_LEN), jnp.float32)
    bias = jnp.zeros((3, TRG_LEN), jnp.float32)
    rmean = jnp.zeros((3, TRG_LEN), jnp.float32)
    rvar = jnp.ones((3, TRG_LEN), jnp.float32)
    gam = weight / jnp.sqrt(rvar + BN_EPS)
    bet = bias - rmean * gam
    return gam, bet   # (3, L) each


if __name__ == "__main__":
    key = jax.random.PRNGKey(0)
    k_x, k_keys, k_param = jax.random.split(key, 3)

    x = jax.random.normal(k_x, (BATCH, TRG_LEN, D_MODEL), jnp.float32)
    keys = jax.random.normal(k_keys, (BATCH, SRC_LEN, D_MODEL), jnp.float32)

    params = make_params(k_param)
    gam, bet = make_bn_affine()

    # Causal mask: triu(ones, diagonal=1) * -100000  (shape (trg_len, trg_len)).
    mask = jnp.triu(jnp.ones((TRG_LEN, TRG_LEN), jnp.float32), k=1) * -100000.0

    out = decoder_pallas(x, keys, mask, params, gam, bet)
    out = jax.block_until_ready(out)

    ref = decoder_ref(x, keys, mask, params, gam, bet)
    # Tolerance 2e-3: kernel uses pl.reciprocal(approx=True) for the softmax denom.
    np.testing.assert_allclose(np.asarray(out), np.asarray(ref),
                               rtol=2e-3, atol=2e-3)
    print("KERNEL_OK")
</pallas_src>

<mosaic_0001>
module attributes {stable_mosaic.version = 11 : i64} {
  func.func @decoder_kernel(%arg0: i32, %arg1: memref<16x32xf32, #tpu.memory_space<vmem>>, %arg2: memref<16x32xf32, #tpu.memory_space<vmem>>, %arg3: memref<8x8xf32, #tpu.memory_space<vmem>>, %arg4: memref<32x96xf32, #tpu.memory_space<vmem>>, %arg5: memref<1x96xf32, #tpu.memory_space<vmem>>, %arg6: memref<32x32xf32, #tpu.memory_space<vmem>>, %arg7: memref<1x32xf32, #tpu.memory_space<vmem>>, %arg8: memref<32x128xf32, #tpu.memory_space<vmem>>, %arg9: memref<1x128xf32, #tpu.memory_space<vmem>>, %arg10: memref<128x32xf32, #tpu.memory_space<vmem>>, %arg11: memref<1x32xf32, #tpu.memory_space<vmem>>, %arg12: memref<3x16x32xf32, #tpu.memory_space<vmem>>, %arg13: memref<3x16x32xf32, #tpu.memory_space<vmem>>, %arg14: memref<16x32xf32, #tpu.memory_space<vmem>>) attributes {dimension_semantics = [#tpu.dimension_semantics<arbitrary>], iteration_bounds = array<i64: 1>, scalar_prefetch = 0 : i64, scratch_operands = 0 : i64, tpu.core_type = #tpu.core_type<tc>, window_params = [{pipeline_mode = #tpu.pipeline_mode<synchronous>, transform_indices = @transform_0, window_bounds = array<i64: 16, 32>}, {pipeline_mode = #tpu.pipeline_mode<synchronous>, transform_indices = @transform_1, window_bounds = array<i64: 16, 32>}, {pipeline_mode = #tpu.pipeline_mode<synchronous>, transform_indices = @transform_2, window_bounds = array<i64: 8, 8>}, {pipeline_mode = #tpu.pipeline_mode<synchronous>, transform_indices = @transform_3, window_bounds = array<i64: 32, 96>}, {pipeline_mode = #tpu.pipeline_mode<synchronous>, transform_indices = @transform_4, window_bounds = array<i64: 1, 96>}, {pipeline_mode = #tpu.pipeline_mode<synchronous>, transform_indices = @transform_5, window_bounds = array<i64: 32, 32>}, {pipeline_mode = #tpu.pipeline_mode<synchronous>, transform_indices = @transform_6, window_bounds = array<i64: 1, 32>}, {pipeline_mode = #tpu.pipeline_mode<synchronous>, transform_indices = @transform_7, window_bounds = array<i64: 32, 128>}, {pipeline_mode = #tpu.pipeline_mode<synchronous>, transform_indices = @transform_8, window_bounds = array<i64: 1, 128>}, {pipeline_mode = #tpu.pipeline_mode<synchronous>, transform_indices = @transform_9, window_bounds = array<i64: 128, 32>}, {pipeline_mode = #tpu.pipeline_mode<synchronous>, transform_indices = @transform_10, window_bounds = array<i64: 1, 32>}, {pipeline_mode = #tpu.pipeline_mode<synchronous>, transform_indices = @transform_11, window_bounds = array<i64: 3, 16, 32>}, {pipeline_mode = #tpu.pipeline_mode<synchronous>, transform_indices = @transform_12, window_bounds = array<i64: 3, 16, 32>}, {pipeline_mode = #tpu.pipeline_mode<synchronous>, transform_indices = @transform_13, window_bounds = array<i64: 16, 32>}]} {
    %c0 = arith.constant 0 : index
    %c0_0 = arith.constant 0 : index
    %0 = vector.load %arg1[%c0, %c0_0] : memref<16x32xf32, #tpu.memory_space<vmem>>, vector<16x32xf32>
    %c0_1 = arith.constant 0 : index
    %c0_2 = arith.constant 0 : index
    %1 = vector.load %arg2[%c0_1, %c0_2] : memref<16x32xf32, #tpu.memory_space<vmem>>, vector<16x32xf32>
    %c0_3 = arith.constant 0 : index
    %c0_4 = arith.constant 0 : index
    %2 = vector.load %arg3[%c0_3, %c0_4] : memref<8x8xf32, #tpu.memory_space<vmem>>, vector<8x8xf32>
    %c0_5 = arith.constant 0 : index
    %c0_6 = arith.constant 0 : index
    %3 = vector.load %arg4[%c0_5, %c0_6] : memref<32x96xf32, #tpu.memory_space<vmem>>, vector<32x96xf32>
    %c0_7 = arith.constant 0 : index
    %c0_8 = arith.constant 0 : index
    %4 = vector.load %arg5[%c0_7, %c0_8] : memref<1x96xf32, #tpu.memory_space<vmem>>, vector<1x96xf32>
    %c0_9 = arith.constant 0 : index
    %c0_10 = arith.constant 0 : index
    %5 = vector.load %arg6[%c0_9, %c0_10] : memref<32x32xf32, #tpu.memory_space<vmem>>, vector<32x32xf32>
    %c0_11 = arith.constant 0 : index
    %c0_12 = arith.constant 0 : index
    %6 = vector.load %arg7[%c0_11, %c0_12] : memref<1x32xf32, #tpu.memory_space<vmem>>, vector<1x32xf32>
    %c0_13 = arith.constant 0 : index
    %c0_14 = arith.constant 0 : index
    %7 = vector.load %arg8[%c0_13, %c0_14] : memref<32x128xf32, #tpu.memory_space<vmem>>, vector<32x128xf32>
    %c0_15 = arith.constant 0 : index
    %c0_16 = arith.constant 0 : index
    %8 = vector.load %arg9[%c0_15, %c0_16] : memref<1x128xf32, #tpu.memory_space<vmem>>, vector<1x128xf32>
    %c0_17 = arith.constant 0 : index
    %c0_18 = arith.constant 0 : index
    %9 = vector.load %arg10[%c0_17, %c0_18] : memref<128x32xf32, #tpu.memory_space<vmem>>, vector<128x32xf32>
    %c0_19 = arith.constant 0 : index
    %c0_20 = arith.constant 0 : index
    %10 = vector.load %arg11[%c0_19, %c0_20] : memref<1x32xf32, #tpu.memory_space<vmem>>, vector<1x32xf32>
    %cst = arith.constant dense<0.000000e+00> : vector<16x96xf32>
    %11 = tpu.matmul %0, %3, %cst {dimension_numbers = #tpu.dot_dimension_numbers<[1], [0], [0], [1], [0, 0, 1, 1], [], []>} : vector<16x32xf32>, vector<32x96xf32>, vector<16x96xf32> -> vector<16x96xf32>
    %12 = vector.broadcast %4 : vector<1x96xf32> to vector<16x96xf32>
    %13 = arith.addf %11, %12 : vector<16x96xf32>
    %14 = vector.extract_strided_slice %13 {offsets = [0, 0], sizes = [16, 32], strides = [1, 1]} : vector<16x96xf32> to vector<16x32xf32>
    %15 = vector.extract_strided_slice %13 {offsets = [0, 32], sizes = [16, 32], strides = [1, 1]} : vector<16x96xf32> to vector<16x32xf32>
    %16 = vector.extract_strided_slice %13 {offsets = [0, 64], sizes = [16, 32], strides = [1, 1]} : vector<16x96xf32> to vector<16x32xf32>
    %17 = vector.extract_strided_slice %14 {offsets = [0, 0], sizes = [8, 32], strides = [1, 1]} : vector<16x32xf32> to vector<8x32xf32>
    %18 = vector.extract_strided_slice %15 {offsets = [0, 0], sizes = [8, 32], strides = [1, 1]} : vector<16x32xf32> to vector<8x32xf32>
    %19 = vector.extract_strided_slice %16 {offsets = [0, 0], sizes = [8, 32], strides = [1, 1]} : vector<16x32xf32> to vector<8x32xf32>
    %20 = vector.extract_strided_slice %17 {offsets = [0, 0], sizes = [8, 8], strides = [1, 1]} : vector<8x32xf32> to vector<8x8xf32>
    %21 = vector.extract_strided_slice %18 {offsets = [0, 0], sizes = [8, 8], strides = [1, 1]} : vector<8x32xf32> to vector<8x8xf32>
    %22 = vector.extract_strided_slice %19 {offsets = [0, 0], sizes = [8, 8], strides = [1, 1]} : vector<8x32xf32> to vector<8x8xf32>
    %cst_21 = arith.constant dense<0.000000e+00> : vector<8x8xf32>
    %23 = tpu.matmul %20, %21, %cst_21 {dimension_numbers = #tpu.dot_dimension_numbers<[1], [1], [0], [0], [0, 0, 1, 0], [], []>} : vector<8x8xf32>, vector<8x8xf32>, vector<8x8xf32> -> vector<8x8xf32>
    %24 = arith.addf %23, %2 : vector<8x8xf32>
    %cst_22 = arith.constant dense<0xFF800000> : vector<8xf32>
    %25 = vector.multi_reduction <maximumf>, %24, %cst_22 [1] : vector<8x8xf32> to vector<8xf32>
    %26 = vector.shape_cast %25 : vector<8xf32> to vector<8x1xf32>
    %27 = vector.broadcast %26 : vector<8x1xf32> to vector<8x8xf32>
    %28 = arith.subf %24, %27 : vector<8x8xf32>
    %29 = math.exp %28 : vector<8x8xf32>
    %cst_23 = arith.constant dense<0.000000e+00> : vector<8xf32>
    %30 = vector.multi_reduction <add>, %29, %cst_23 [1] : vector<8x8xf32> to vector<8xf32>
    %31 = vector.shape_cast %30 : vector<8xf32> to vector<8x1xf32>
    %32 = tpu.reciprocal %31 {approx = true} : vector<8x1xf32> -> vector<8x1xf32>
    %33 = vector.broadcast %32 : vector<8x1xf32> to vector<8x8xf32>
    %34 = arith.mulf %29, %33 : vector<8x8xf32>
    %cst_24 = arith.constant dense<0.000000e+00> : vector<8x8xf32>
    %35 = tpu.matmul %34, %22, %cst_24 {dimension_numbers = #tpu.dot_dimension_numbers<[1], [0], [0], [1], [0, 0, 1, 1], [], []>} : vector<8x8xf32>, vector<8x8xf32>, vector<8x8xf32> -> vector<8x8xf32>
    %36 = vector.extract_strided_slice %17 {offsets = [0, 8], sizes = [8, 8], strides = [1, 1]} : vector<8x32xf32> to vector<8x8xf32>
    %37 = vector.extract_strided_slice %18 {offsets = [0, 8], sizes = [8, 8], strides = [1, 1]} : vector<8x32xf32> to vector<8x8xf32>
    %38 = vector.extract_strided_slice %19 {offsets = [0, 8], sizes = [8, 8], strides = [1, 1]} : vector<8x32xf32> to vector<8x8xf32>
    %cst_25 = arith.constant dense<0.000000e+00> : vector<8x8xf32>
    %39 = tpu.matmul %36, %37, %cst_25 {dimension_numbers = #tpu.dot_dimension_numbers<[1], [1], [0], [0], [0, 0, 1, 0], [], []>} : vector<8x8xf32>, vector<8x8xf32>, vector<8x8xf32> -> vector<8x8xf32>
    %40 = arith.addf %39, %2 : vector<8x8xf32>
    %cst_26 = arith.constant dense<0xFF800000> : vector<8xf32>
    %41 = vector.multi_reduction <maximumf>, %40, %cst_26 [1] : vector<8x8xf32> to vector<8xf32>
    %42 = vector.shape_cast %41 : vector<8xf32> to vector<8x1xf32>
    %43 = vector.broadcast %42 : vector<8x1xf32> to vector<8x8xf32>
    %44 = arith.subf %40, %43 : vector<8x8xf32>
    %45 = math.exp %44 : vector<8x8xf32>
    %cst_27 = arith.constant dense<0.000000e+00> : vector<8xf32>
    %46 = vector.multi_reduction <add>, %45, %cst_27 [1] : vector<8x8xf32> to vector<8xf32>
    %47 = vector.shape_cast %46 : vector<8xf32> to vector<8x1xf32>
    %48 = tpu.reciprocal %47 {approx = true} : vector<8x1xf32> -> vector<8x1xf32>
    %49 = vector.broadcast %48 : vector<8x1xf32> to vector<8x8xf32>
    %50 = arith.mulf %45, %49 : vector<8x8xf32>
    %cst_28 = arith.constant dense<0.000000e+00> : vector<8x8xf32>
    %51 = tpu.matmul %50, %38, %cst_28 {dimension_numbers = #tpu.dot_dimension_numbers<[1], [0], [0], [1], [0, 0, 1, 1], [], []>} : vector<8x8xf32>, vector<8x8xf32>, vector<8x8xf32> -> vector<8x8xf32>
    %52 = vector.extract_strided_slice %17 {offsets = [0, 16], sizes = [8, 8], strides = [1, 1]} : vector<8x32xf32> to vector<8x8xf32>
    %53 = vector.extract_strided_slice %18 {offsets = [0, 16], sizes = [8, 8], strides = [1, 1]} : vector<8x32xf32> to vector<8x8xf32>
    %54 = vector.extract_strided_slice %19 {offsets = [0, 16], sizes = [8, 8], strides = [1, 1]} : vector<8x32xf32> to vector<8x8xf32>
    %cst_29 = arith.constant dense<0.000000e+00> : vector<8x8xf32>
    %55 = tpu.matmul %52, %53, %cst_29 {dimension_numbers = #tpu.dot_dimension_numbers<[1], [1], [0], [0], [0, 0, 1, 0], [], []>} : vector<8x8xf32>, vector<8x8xf32>, vector<8x8xf32> -> vector<8x8xf32>
    %56 = arith.addf %55, %2 : vector<8x8xf32>
    %cst_30 = arith.constant dense<0xFF800000> : vector<8xf32>
    %57 = vector.multi_reduction <maximumf>, %56, %cst_30 [1] : vector<8x8xf32> to vector<8xf32>
    %58 = vector.shape_cast %57 : vector<8xf32> to vector<8x1xf32>
    %59 = vector.broadcast %58 : vector<8x1xf32> to vector<8x8xf32>
    %60 = arith.subf %56, %59 : vector<8x8xf32>
    %61 = math.exp %60 : vector<8x8xf32>
    %cst_31 = arith.constant dense<0.000000e+00> : vector<8xf32>
    %62 = vector.multi_reduction <add>, %61, %cst_31 [1] : vector<8x8xf32> to vector<8xf32>
    %63 = vector.shape_cast %62 : vector<8xf32> to vector<8x1xf32>
    %64 = tpu.reciprocal %63 {approx = true} : vector<8x1xf32> -> vector<8x1xf32>
    %65 = vector.broadcast %64 : vector<8x1xf32> to vector<8x8xf32>
    %66 = arith.mulf %61, %65 : vector<8x8xf32>
    %cst_32 = arith.constant dense<0.000000e+00> : vector<8x8xf32>
    %67 = tpu.matmul %66, %54, %cst_32 {dimension_numbers = #tpu.dot_dimension_numbers<[1], [0], [0], [1], [0, 0, 1, 1], [], []>} : vector<8x8xf32>, vector<8x8xf32>, vector<8x8xf32> -> vector<8x8xf32>
    %68 = vector.extract_strided_slice %17 {offsets = [0, 24], sizes = [8, 8], strides = [1, 1]} : vector<8x32xf32> to vector<8x8xf32>
    %69 = vector.extract_strided_slice %18 {offsets = [0, 24], sizes = [8, 8], strides = [1, 1]} : vector<8x32xf32> to vector<8x8xf32>
    %70 = vector.extract_strided_slice %19 {offsets = [0, 24], sizes = [8, 8], strides = [1, 1]} : vector<8x32xf32> to vector<8x8xf32>
    %cst_33 = arith.constant dense<0.000000e+00> : vector<8x8xf32>
    %71 = tpu.matmul %68, %69, %cst_33 {dimension_numbers = #tpu.dot_dimension_numbers<[1], [1], [0], [0], [0, 0, 1, 0], [], []>} : vector<8x8xf32>, vector<8x8xf32>, vector<8x8xf32> -> vector<8x8xf32>
    %72 = arith.addf %71, %2 : vector<8x8xf32>
    %cst_34 = arith.constant dense<0xFF800000> : vector<8xf32>
    %73 = vector.multi_reduction <maximumf>, %72, %cst_34 [1] : vector<8x8xf32> to vector<8xf32>
    %74 = vector.shape_cast %73 : vector<8xf32> to vector<8x1xf32>
    %75 = vector.broadcast %74 : vector<8x1xf32> to vector<8x8xf32>
    %76 = arith.subf %72, %75 : vector<8x8xf32>
    %77 = math.exp %76 : vector<8x8xf32>
    %cst_35 = arith.constant dense<0.000000e+00> : vector<8xf32>
    %78 = vector.multi_reduction <add>, %77, %cst_35 [1] : vector<8x8xf32> to vector<8xf32>
    %79 = vector.shape_cast %78 : vector<8xf32> to vector<8x1xf32>
    %80 = tpu.reciprocal %79 {approx = true} : vector<8x1xf32> -> vector<8x1xf32>
    %81 = vector.broadcast %80 : vector<8x1xf32> to vector<8x8xf32>
    %82 = arith.mulf %77, %81 : vector<8x8xf32>
    %cst_36 = arith.constant dense<0.000000e+00> : vector<8x8xf32>
    %83 = tpu.matmul %82, %70, %cst_36 {dimension_numbers = #tpu.dot_dimension_numbers<[1], [0], [0], [1], [0, 0, 1, 1], [], []>} : vector<8x8xf32>, vector<8x8xf32>, vector<8x8xf32> -> vector<8x8xf32>
    %84 = tpu.concatenate %35, %51, %67, %83 in 1 : vector<8x8xf32>, vector<8x8xf32>, vector<8x8xf32>, vector<8x8xf32> -> vector<8x32xf32>
    %85 = vector.extract_strided_slice %14 {offsets = [8, 0], sizes = [8, 32], strides = [1, 1]} : vector<16x32xf32> to vector<8x32xf32>
    %86 = vector.extract_strided_slice %15 {offsets = [8, 0], sizes = [8, 32], strides = [1, 1]} : vector<16x32xf32> to vector<8x32xf32>
    %87 = vector.extract_strided_slice %16 {offsets = [8, 0], sizes = [8, 32], strides = [1, 1]} : vector<16x32xf32> to vector<8x32xf32>
    %88 = vector.extract_strided_slice %85 {offsets = [0, 0], sizes = [8, 8], strides = [1, 1]} : vector<8x32xf32> to vector<8x8xf32>
    %89 = vector.extract_strided_slice %86 {offsets = [0, 0], sizes = [8, 8], strides = [1, 1]} : vector<8x32xf32> to vector<8x8xf32>
    %90 = vector.extract_strided_slice %87 {offsets = [0, 0], sizes = [8, 8], strides = [1, 1]} : vector<8x32xf32> to vector<8x8xf32>
    %cst_37 = arith.constant dense<0.000000e+00> : vector<8x8xf32>
    %91 = tpu.matmul %88, %89, %cst_37 {dimension_numbers = #tpu.dot_dimension_numbers<[1], [1], [0], [0], [0, 0, 1, 0], [], []>} : vector<8x8xf32>, vector<8x8xf32>, vector<8x8xf32> -> vector<8x8xf32>
    %92 = arith.addf %91, %2 : vector<8x8xf32>
    %cst_38 = arith.constant dense<0xFF800000> : vector<8xf32>
    %93 = vector.multi_reduction <maximumf>, %92, %cst_38 [1] : vector<8x8xf32> to vector<8xf32>
    %94 = vector.shape_cast %93 : vector<8xf32> to vector<8x1xf32>
    %95 = vector.broadcast %94 : vector<8x1xf32> to vector<8x8xf32>
    %96 = arith.subf %92, %95 : vector<8x8xf32>
    %97 = math.exp %96 : vector<8x8xf32>
    %cst_39 = arith.constant dense<0.000000e+00> : vector<8xf32>
    %98 = vector.multi_reduction <add>, %97, %cst_39 [1] : vector<8x8xf32> to vector<8xf32>
    %99 = vector.shape_cast %98 : vector<8xf32> to vector<8x1xf32>
    %100 = tpu.reciprocal %99 {approx = true} : vector<8x1xf32> -> vector<8x1xf32>
    %101 = vector.broadcast %100 : vector<8x1xf32> to vector<8x8xf32>
    %102 = arith.mulf %97, %101 : vector<8x8xf32>
    %cst_40 = arith.constant dense<0.000000e+00> : vector<8x8xf32>
    %103 = tpu.matmul %102, %90, %cst_40 {dimension_numbers = #tpu.dot_dimension_numbers<[1], [0], [0], [1], [0, 0, 1, 1], [], []>} : vector<8x8xf32>, vector<8x8xf32>, vector<8x8xf32> -> vector<8x8xf32>
    %104 = vector.extract_strided_slice %85 {offsets = [0, 8], sizes = [8, 8], strides = [1, 1]} : vector<8x32xf32> to vector<8x8xf32>
    %105 = vector.extract_strided_slice %86 {offsets = [0, 8], sizes = [8, 8], strides = [1, 1]} : vector<8x32xf32> to vector<8x8xf32>
    %106 = vector.extract_strided_slice %87 {offsets = [0, 8], sizes = [8, 8], strides = [1, 1]} : vector<8x32xf32> to vector<8x8xf32>
    %cst_41 = arith.constant dense<0.000000e+00> : vector<8x8xf32>
    %107 = tpu.matmul %104, %105, %cst_41 {dimension_numbers = #tpu.dot_dimension_numbers<[1], [1], [0], [0], [0, 0, 1, 0], [], []>} : vector<8x8xf32>, vector<8x8xf32>, vector<8x8xf32> -> vector<8x8xf32>
    %108 = arith.addf %107, %2 : vector<8x8xf32>
    %cst_42 = arith.constant dense<0xFF800000> : vector<8xf32>
    %109 = vector.multi_reduction <maximumf>, %108, %cst_42 [1] : vector<8x8xf32> to vector<8xf32>
    %110 = vector.shape_cast %109 : vector<8xf32> to vector<8x1xf32>
    %111 = vector.broadcast %110 : vector<8x1xf32> to vector<8x8xf32>
    %112 = arith.subf %108, %111 : vector<8x8xf32>
    %113 = math.exp %112 : vector<8x8xf32>
    %cst_43 = arith.constant dense<0.000000e+00> : vector<8xf32>
    %114 = vector.multi_reduction <add>, %113, %cst_43 [1] : vector<8x8xf32> to vector<8xf32>
    %115 = vector.shape_cast %114 : vector<8xf32> to vector<8x1xf32>
    %116 = tpu.reciprocal %115 {approx = true} : vector<8x1xf32> -> vector<8x1xf32>
    %117 = vector.broadcast %116 : vector<8x1xf32> to vector<8x8xf32>
    %118 = arith.mulf %113, %117 : vector<8x8xf32>
    %cst_44 = arith.constant dense<0.000000e+00> : vector<8x8xf32>
    %119 = tpu.matmul %118, %106, %cst_44 {dimension_numbers = #tpu.dot_dimension_numbers<[1], [0], [0], [1], [0, 0, 1, 1], [], []>} : vector<8x8xf32>, vector<8x8xf32>, vector<8x8xf32> -> vector<8x8xf32>
    %120 = vector.extract_strided_slice %85 {offsets = [0, 16], sizes = [8, 8], strides = [1, 1]} : vector<8x32xf32> to vector<8x8xf32>
    %121 = vector.extract_strided_slice %86 {offsets = [0, 16], sizes = [8, 8], strides = [1, 1]} : vector<8x32xf32> to vector<8x8xf32>
    %122 = vector.extract_strided_slice %87 {offsets = [0, 16], sizes = [8, 8], strides = [1, 1]} : vector<8x32xf32> to vector<8x8xf32>
    %cst_45 = arith.constant dense<0.000000e+00> : vector<8x8xf32>
    %123 = tpu.matmul %120, %121, %cst_45 {dimension_numbers = #tpu.dot_dimension_numbers<[1], [1], [0], [0], [0, 0, 1, 0], [], []>} : vector<8x8xf32>, vector<8x8xf32>, vector<8x8xf32> -> vector<8x8xf32>
    %124 = arith.addf %123, %2 : vector<8x8xf32>
    %cst_46 = arith.constant dense<0xFF800000> : vector<8xf32>
    %125 = vector.multi_reduction <maximumf>, %124, %cst_46 [1] : vector<8x8xf32> to vector<8xf32>
    %126 = vector.shape_cast %125 : vector<8xf32> to vector<8x1xf32>
    %127 = vector.broadcast %126 : vector<8x1xf32> to vector<8x8xf32>
    %128 = arith.subf %124, %127 : vector<8x8xf32>
    %129 = math.exp %128 : vector<8x8xf32>
    %cst_47 = arith.constant dense<0.000000e+00> : vector<8xf32>
    %130 = vector.multi_reduction <add>, %129, %cst_47 [1] : vector<8x8xf32> to vector<8xf32>
    %131 = vector.shape_cast %130 : vector<8xf32> to vector<8x1xf32>
    %132 = tpu.reciprocal %131 {approx = true} : vector<8x1xf32> -> vector<8x1xf32>
    %133 = vector.broadcast %132 : vector<8x1xf32> to vector<8x8xf32>
    %134 = arith.mulf %129, %133 : vector<8x8xf32>
    %cst_48 = arith.constant dense<0.000000e+00> : vector<8x8xf32>
    %135 = tpu.matmul %134, %122, %cst_48 {dimension_numbers = #tpu.dot_dimension_numbers<[1], [0], [0], [1], [0, 0, 1, 1], [], []>} : vector<8x8xf32>, vector<8x8xf32>, vector<8x8xf32> -> vector<8x8xf32>
    %136 = vector.extract_strided_slice %85 {offsets = [0, 24], sizes = [8, 8], strides = [1, 1]} : vector<8x32xf32> to vector<8x8xf32>
    %137 = vector.extract_strided_slice %86 {offsets = [0, 24], sizes = [8, 8], strides = [1, 1]} : vector<8x32xf32> to vector<8x8xf32>
    %138 = vector.extract_strided_slice %87 {offsets = [0, 24], sizes = [8, 8], strides = [1, 1]} : vector<8x32xf32> to vector<8x8xf32>
    %cst_49 = arith.constant dense<0.000000e+00> : vector<8x8xf32>
    %139 = tpu.matmul %136, %137, %cst_49 {dimension_numbers = #tpu.dot_dimension_numbers<[1], [1], [0], [0], [0, 0, 1, 0], [], []>} : vector<8x8xf32>, vector<8x8xf32>, vector<8x8xf32> -> vector<8x8xf32>
    %140 = arith.addf %139, %2 : vector<8x8xf32>
    %cst_50 = arith.constant dense<0xFF800000> : vector<8xf32>
    %141 = vector.multi_reduction <maximumf>, %140, %cst_50 [1] : vector<8x8xf32> to vector<8xf32>
    %142 = vector.shape_cast %141 : vector<8xf32> to vector<8x1xf32>
    %143 = vector.broadcast %142 : vector<8x1xf32> to vector<8x8xf32>
    %144 = arith.subf %140, %143 : vector<8x8xf32>
    %145 = math.exp %144 : vector<8x8xf32>
    %cst_51 = arith.constant dense<0.000000e+00> : vector<8xf32>
    %146 = vector.multi_reduction <add>, %145, %cst_51 [1] : vector<8x8xf32> to vector<8xf32>
    %147 = vector.shape_cast %146 : vector<8xf32> to vector<8x1xf32>
    %148 = tpu.reciprocal %147 {approx = true} : vector<8x1xf32> -> vector<8x1xf32>
    %149 = vector.broadcast %148 : vector<8x1xf32> to vector<8x8xf32>
    %150 = arith.mulf %145, %149 : vector<8x8xf32>
    %cst_52 = arith.constant dense<0.000000e+00> : vector<8x8xf32>
    %151 = tpu.matmul %150, %138, %cst_52 {dimension_numbers = #tpu.dot_dimension_numbers<[1], [0], [0], [1], [0, 0, 1, 1], [], []>} : vector<8x8xf32>, vector<8x8xf32>, vector<8x8xf32> -> vector<8x8xf32>
    %152 = tpu.concatenate %103, %119, %135, %151 in 1 : vector<8x8xf32>, vector<8x8xf32>, vector<8x8xf32>, vector<8x8xf32> -> vector<8x32xf32>
    %153 = tpu.concatenate %84, %152 in 0 : vector<8x32xf32>, vector<8x32xf32> -> vector<16x32xf32>
    %cst_53 = arith.constant dense<0.000000e+00> : vector<16x32xf32>
    %154 = tpu.matmul %153, %5, %cst_53 {dimension_numbers = #tpu.dot_dimension_numbers<[1], [0], [0], [1], [0, 0, 1, 1], [], []>} : vector<16x32xf32>, vector<32x32xf32>, vector<16x32xf32> -> vector<16x32xf32>
    %155 = vector.broadcast %6 : vector<1x32xf32> to vector<16x32xf32>
    %156 = arith.addf %154, %155 : vector<16x32xf32>
    %157 = arith.addf %156, %0 : vector<16x32xf32>
    %c0_54 = arith.constant 0 : index
    %c0_55 = arith.constant 0 : index
    %c0_56 = arith.constant 0 : index
    %158 = vector.load %arg12[%c0_54, %c0_55, %c0_56] : memref<3x16x32xf32, #tpu.memory_space<vmem>>, vector<1x16x32xf32>
    %159 = vector.shape_cast %158 : vector<1x16x32xf32> to vector<16x32xf32>
    %160 = arith.mulf %157, %159 : vector<16x32xf32>
    %c0_57 = arith.constant 0 : index
    %c0_58 = arith.constant 0 : index
    %c0_59 = arith.constant 0 : index
    %161 = vector.load %arg13[%c0_57, %c0_58, %c0_59] : memref<3x16x32xf32, #tpu.memory_space<vmem>>, vector<1x16x32xf32>
    %162 = vector.shape_cast %161 : vector<1x16x32xf32> to vector<16x32xf32>
    %163 = arith.addf %160, %162 : vector<16x32xf32>
    %164 = vector.extract_strided_slice %3 {offsets = [0, 0], sizes = [32, 32], strides = [1, 1]} : vector<32x96xf32> to vector<32x32xf32>
    %cst_60 = arith.constant dense<0.000000e+00> : vector<16x32xf32>
    %165 = tpu.matmul %163, %164, %cst_60 {dimension_numbers = #tpu.dot_dimension_numbers<[1], [0], [0], [1], [0, 0, 1, 1], [], []>} : vector<16x32xf32>, vector<32x32xf32>, vector<16x32xf32> -> vector<16x32xf32>
    %166 = vector.extract_strided_slice %4 {offsets = [0, 0], sizes = [1, 32], strides = [1, 1]} : vector<1x96xf32> to vector<1x32xf32>
    %167 = vector.broadcast %166 : vector<1x32xf32> to vector<16x32xf32>
    %168 = arith.addf %165, %167 : vector<16x32xf32>
    %169 = vector.extract_strided_slice %3 {offsets = [0, 32], sizes = [32, 64], strides = [1, 1]} : vector<32x96xf32> to vector<32x64xf32>
    %cst_61 = arith.constant dense<0.000000e+00> : vector<16x64xf32>
    %170 = tpu.matmul %1, %169, %cst_61 {dimension_numbers = #tpu.dot_dimension_numbers<[1], [0], [0], [1], [0, 0, 1, 1], [], []>} : vector<16x32xf32>, vector<32x64xf32>, vector<16x64xf32> -> vector<16x64xf32>
    %171 = vector.extract_strided_slice %4 {offsets = [0, 32], sizes = [1, 64], strides = [1, 1]} : vector<1x96xf32> to vector<1x64xf32>
    %172 = vector.broadcast %171 : vector<1x64xf32> to vector<16x64xf32>
    %173 = arith.addf %170, %172 : vector<16x64xf32>
    %174 = vector.extract_strided_slice %173 {offsets = [0, 0], sizes = [16, 32], strides = [1, 1]} : vector<16x64xf32> to vector<16x32xf32>
    %175 = vector.extract_strided_slice %173 {offsets = [0, 32], sizes = [16, 32], strides = [1, 1]} : vector<16x64xf32> to vector<16x32xf32>
    %176 = vector.extract_strided_slice %168 {offsets = [0, 0], sizes = [8, 32], strides = [1, 1]} : vector<16x32xf32> to vector<8x32xf32>
    %177 = vector.extract_strided_slice %174 {offsets = [0, 0], sizes = [8, 32], strides = [1, 1]} : vector<16x32xf32> to vector<8x32xf32>
    %178 = vector.extract_strided_slice %175 {offsets = [0, 0], sizes = [8, 32], strides = [1, 1]} : vector<16x32xf32> to vector<8x32xf32>
    %179 = vector.extract_strided_slice %176 {offsets = [0, 0], sizes = [8, 8], strides = [1, 1]} : vector<8x32xf32> to vector<8x8xf32>
    %180 = vector.extract_strided_slice %177 {offsets = [0, 0], sizes = [8, 8], strides = [1, 1]} : vector<8x32xf32> to vector<8x8xf32>
    %181 = vector.extract_strided_slice %178 {offsets = [0, 0], sizes = [8, 8], strides = [1, 1]} : vector<8x32xf32> to vector<8x8xf32>
    %cst_62 = arith.constant dense<0.000000e+00> : vector<8x8xf32>
    %182 = tpu.matmul %179, %180, %cst_62 {dimension_numbers = #tpu.dot_dimension_numbers<[1], [1], [0], [0], [0, 0, 1, 0], [], []>} : vector<8x8xf32>, vector<8x8xf32>, vector<8x8xf32> -> vector<8x8xf32>
    %cst_63 = arith.constant dense<0xFF800000> : vector<8xf32>
    %183 = vector.multi_reduction <maximumf>, %182, %cst_63 [1] : vector<8x8xf32> to vector<8xf32>
    %184 = vector.shape_cast %183 : vector<8xf32> to vector<8x1xf32>
    %185 = vector.broadcast %184 : vector<8x1xf32> to vector<8x8xf32>
    %186 = arith.subf %182, %185 : vector<8x8xf32>
    %187 = math.exp %186 : vector<8x8xf32>
    %cst_64 = arith.constant dense<0.000000e+00> : vector<8xf32>
    %188 = vector.multi_reduction <add>, %187, %cst_64 [1] : vector<8x8xf32> to vector<8xf32>
    %189 = vector.shape_cast %188 : vector<8xf32> to vector<8x1xf32>
    %190 = tpu.reciprocal %189 {approx = true} : vector<8x1xf32> -> vector<8x1xf32>
    %191 = vector.broadcast %190 : vector<8x1xf32> to vector<8x8xf32>
    %192 = arith.mulf %187, %191 : vector<8x8xf32>
    %cst_65 = arith.constant dense<0.000000e+00> : vector<8x8xf32>
    %193 = tpu.matmul %192, %181, %cst_65 {dimension_numbers = #tpu.dot_dimension_numbers<[1], [0], [0], [1], [0, 0, 1, 1], [], []>} : vector<8x8xf32>, vector<8x8xf32>, vector<8x8xf32> -> vector<8x8xf32>
    %194 = vector.extract_strided_slice %176 {offsets = [0, 8], sizes = [8, 8], strides = [1, 1]} : vector<8x32xf32> to vector<8x8xf32>
    %195 = vector.extract_strided_slice %177 {offsets = [0, 8], sizes = [8, 8], strides = [1, 1]} : vector<8x32xf32> to vector<8x8xf32>
    %196 = vector.extract_strided_slice %178 {offsets = [0, 8], sizes = [8, 8], strides = [1, 1]} : vector<8x32xf32> to vector<8x8xf32>
    %cst_66 = arith.constant dense<0.000000e+00> : vector<8x8xf32>
    %197 = tpu.matmul %194, %195, %cst_66 {dimension_numbers = #tpu.dot_dimension_numbers<[1], [1], [0], [0], [0, 0, 1, 0], [], []>} : vector<8x8xf32>, vector<8x8xf32>, vector<8x8xf32> -> vector<8x8xf32>
    %cst_67 = arith.constant dense<0xFF800000> : vector<8xf32>
    %198 = vector.multi_reduction <maximumf>, %197, %cst_67 [1] : vector<8x8xf32> to vector<8xf32>
    %199 = vector.shape_cast %198 : vector<8xf32> to vector<8x1xf32>
    %200 = vector.broadcast %199 : vector<8x1xf32> to vector<8x8xf32>
    %201 = arith.subf %197, %200 : vector<8x8xf32>
    %202 = math.exp %201 : vector<8x8xf32>
    %cst_68 = arith.constant dense<0.000000e+00> : vector<8xf32>
    %203 = vector.multi_reduction <add>, %202, %cst_68 [1] : vector<8x8xf32> to vector<8xf32>
    %204 = vector.shape_cast %203 : vector<8xf32> to vector<8x1xf32>
    %205 = tpu.reciprocal %204 {approx = true} : vector<8x1xf32> -> vector<8x1xf32>
    %206 = vector.broadcast %205 : vector<8x1xf32> to vector<8x8xf32>
    %207 = arith.mulf %202, %206 : vector<8x8xf32>
    %cst_69 = arith.constant dense<0.000000e+00> : vector<8x8xf32>
    %208 = tpu.matmul %207, %196, %cst_69 {dimension_numbers = #tpu.dot_dimension_numbers<[1], [0], [0], [1], [0, 0, 1, 1], [], []>} : vector<8x8xf32>, vector<8x8xf32>, vector<8x8xf32> -> vector<8x8xf32>
    %209 = vector.extract_strided_slice %176 {offsets = [0, 16], sizes = [8, 8], strides = [1, 1]} : vector<8x32xf32> to vector<8x8xf32>
    %210 = vector.extract_strided_slice %177 {offsets = [0, 16], sizes = [8, 8], strides = [1, 1]} : vector<8x32xf32> to vector<8x8xf32>
    %211 = vector.extract_strided_slice %178 {offsets = [0, 16], sizes = [8, 8], strides = [1, 1]} : vector<8x32xf32> to vector<8x8xf32>
    %cst_70 = arith.constant dense<0.000000e+00> : vector<8x8xf32>
    %212 = tpu.matmul %209, %210, %cst_70 {dimension_numbers = #tpu.dot_dimension_numbers<[1], [1], [0], [0], [0, 0, 1, 0], [], []>} : vector<8x8xf32>, vector<8x8xf32>, vector<8x8xf32> -> vector<8x8xf32>
    %cst_71 = arith.constant dense<0xFF800000> : vector<8xf32>
    %213 = vector.multi_reduction <maximumf>, %212, %cst_71 [1] : vector<8x8xf32> to vector<8xf32>
    %214 = vector.shape_cast %213 : vector<8xf32> to vector<8x1xf32>
    %215 = vector.broadcast %214 : vector<8x1xf32> to vector<8x8xf32>
    %216 = arith.subf %212, %215 : vector<8x8xf32>
    %217 = math.exp %216 : vector<8x8xf32>
    %cst_72 = arith.constant dense<0.000000e+00> : vector<8xf32>
    %218 = vector.multi_reduction <add>, %217, %cst_72 [1] : vector<8x8xf32> to vector<8xf32>
    %219 = vector.shape_cast %218 : vector<8xf32> to vector<8x1xf32>
    %220 = tpu.reciprocal %219 {approx = true} : vector<8x1xf32> -> vector<8x1xf32>
    %221 = vector.broadcast %220 : vector<8x1xf32> to vector<8x8xf32>
    %222 = arith.mulf %217, %221 : vector<8x8xf32>
    %cst_73 = arith.constant dense<0.000000e+00> : vector<8x8xf32>
    %223 = tpu.matmul %222, %211, %cst_73 {dimension_numbers = #tpu.dot_dimension_numbers<[1], [0], [0], [1], [0, 0, 1, 1], [], []>} : vector<8x8xf32>, vector<8x8xf32>, vector<8x8xf32> -> vector<8x8xf32>
    %224 = vector.extract_strided_slice %176 {offsets = [0, 24], sizes = [8, 8], strides = [1, 1]} : vector<8x32xf32> to vector<8x8xf32>
    %225 = vector.extract_strided_slice %177 {offsets = [0, 24], sizes = [8, 8], strides = [1, 1]} : vector<8x32xf32> to vector<8x8xf32>
    %226 = vector.extract_strided_slice %178 {offsets = [0, 24], sizes = [8, 8], strides = [1, 1]} : vector<8x32xf32> to vector<8x8xf32>
    %cst_74 = arith.constant dense<0.000000e+00> : vector<8x8xf32>
    %227 = tpu.matmul %224, %225, %cst_74 {dimension_numbers = #tpu.dot_dimension_numbers<[1], [1], [0], [0], [0, 0, 1, 0], [], []>} : vector<8x8xf32>, vector<8x8xf32>, vector<8x8xf32> -> vector<8x8xf32>
    %cst_75 = arith.constant dense<0xFF800000> : vector<8xf32>
    %228 = vector.multi_reduction <maximumf>, %227, %cst_75 [1] : vector<8x8xf32> to vector<8xf32>
    %229 = vector.shape_cast %228 : vector<8xf32> to vector<8x1xf32>
    %230 = vector.broadcast %229 : vector<8x1xf32> to vector<8x8xf32>
    %231 = arith.subf %227, %230 : vector<8x8xf32>
    %232 = math.exp %231 : vector<8x8xf32>
    %cst_76 = arith.constant dense<0.000000e+00> : vector<8xf32>
    %233 = vector.multi_reduction <add>, %232, %cst_76 [1] : vector<8x8xf32> to vector<8xf32>
    %234 = vector.shape_cast %233 : vector<8xf32> to vector<8x1xf32>
    %235 = tpu.reciprocal %234 {approx = true} : vector<8x1xf32> -> vector<8x1xf32>
    %236 = vector.broadcast %235 : vector<8x1xf32> to vector<8x8xf32>
    %237 = arith.mulf %232, %236 : vector<8x8xf32>
    %cst_77 = arith.constant dense<0.000000e+00> : vector<8x8xf32>
    %238 = tpu.matmul %237, %226, %cst_77 {dimension_numbers = #tpu.dot_dimension_numbers<[1], [0], [0], [1], [0, 0, 1, 1], [], []>} : vector<8x8xf32>, vector<8x8xf32>, vector<8x8xf32> -> vector<8x8xf32>
    %239 = tpu.concatenate %193, %208, %223, %238 in 1 : vector<8x8xf32>, vector<8x8xf32>, vector<8x8xf32>, vector<8x8xf32> -> vector<8x32xf32>
    %240 = vector.extract_strided_slice %168 {offsets = [8, 0], sizes = [8, 32], strides = [1, 1]} : vector<16x32xf32> to vector<8x32xf32>
    %241 = vector.extract_strided_slice %174 {offsets = [8, 0], sizes = [8, 32], strides = [1, 1]} : vector<16x32xf32> to vector<8x32xf32>
    %242 = vector.extract_strided_slice %175 {offsets = [8, 0], sizes = [8, 32], strides = [1, 1]} : vector<16x32xf32> to vector<8x32xf32>
    %243 = vector.extract_strided_slice %240 {offsets = [0, 0], sizes = [8, 8], strides = [1, 1]} : vector<8x32xf32> to vector<8x8xf32>
    %244 = vector.extract_strided_slice %241 {offsets = [0, 0], sizes = [8, 8], strides = [1, 1]} : vector<8x32xf32> to vector<8x8xf32>
    %245 = vector.extract_strided_slice %242 {offsets = [0, 0], sizes = [8, 8], strides = [1, 1]} : vector<8x32xf32> to vector<8x8xf32>
    %cst_78 = arith.constant dense<0.000000e+00> : vector<8x8xf32>
    %246 = tpu.matmul %243, %244, %cst_78 {dimension_numbers = #tpu.dot_dimension_numbers<[1], [1], [0], [0], [0, 0, 1, 0], [], []>} : vector<8x8xf32>, vector<8x8xf32>, vector<8x8xf32> -> vector<8x8xf32>
    %cst_79 = arith.constant dense<0xFF800000> : vector<8xf32>
    %247 = vector.multi_reduction <maximumf>, %246, %cst_79 [1] : vector<8x8xf32> to vector<8xf32>
    %248 = vector.shape_cast %247 : vector<8xf32> to vector<8x1xf32>
    %249 = vector.broadcast %248 : vector<8x1xf32> to vector<8x8xf32>
    %250 = arith.subf %246, %249 : vector<8x8xf32>
    %251 = math.exp %250 : vector<8x8xf32>
    %cst_80 = arith.constant dense<0.000000e+00> : vector<8xf32>
    %252 = vector.multi_reduction <add>, %251, %cst_80 [1] : vector<8x8xf32> to vector<8xf32>
    %253 = vector.shape_cast %252 : vector<8xf32> to vector<8x1xf32>
    %254 = tpu.reciprocal %253 {approx = true} : vector<8x1xf32> -> vector<8x1xf32>
    %255 = vector.broadcast %254 : vector<8x1xf32> to vector<8x8xf32>
    %256 = arith.mulf %251, %255 : vector<8x8xf32>
    %cst_81 = arith.constant dense<0.000000e+00> : vector<8x8xf32>
    %257 = tpu.matmul %256, %245, %cst_81 {dimension_numbers = #tpu.dot_dimension_numbers<[1], [0], [0], [1], [0, 0, 1, 1], [], []>} : vector<8x8xf32>, vector<8x8xf32>, vector<8x8xf32> -> vector<8x8xf32>
    %258 = vector.extract_strided_slice %240 {offsets = [0, 8], sizes = [8, 8], strides = [1, 1]} : vector<8x32xf32> to vector<8x8xf32>
    %259 = vector.extract_strided_slice %241 {offsets = [0, 8], sizes = [8, 8], strides = [1, 1]} : vector<8x32xf32> to vector<8x8xf32>
    %260 = vector.extract_strided_slice %242 {offsets = [0, 8], sizes = [8, 8], strides = [1, 1]} : vector<8x32xf32> to vector<8x8xf32>
    %cst_82 = arith.constant dense<0.000000e+00> : vector<8x8xf32>
    %261 = tpu.matmul %258, %259, %cst_82 {dimension_numbers = #tpu.dot_dimension_numbers<[1], [1], [0], [0], [0, 0, 1, 0], [], []>} : vector<8x8xf32>, vector<8x8xf32>, vector<8x8xf32> -> vector<8x8xf32>
    %cst_83 = arith.constant dense<0xFF800000> : vector<8xf32>
    %262 = vector.multi_reduction <maximumf>, %261, %cst_83 [1] : vector<8x8xf32> to vector<8xf32>
    %263 = vector.shape_cast %262 : vector<8xf32> to vector<8x1xf32>
    %264 = vector.broadcast %263 : vector<8x1xf32> to vector<8x8xf32>
    %265 = arith.subf %261, %264 : vector<8x8xf32>
    %266 = math.exp %265 : vector<8x8xf32>
    %cst_84 = arith.constant dense<0.000000e+00> : vector<8xf32>
    %267 = vector.multi_reduction <add>, %266, %cst_84 [1] : vector<8x8xf32> to vector<8xf32>
    %268 = vector.shape_cast %267 : vector<8xf32> to vector<8x1xf32>
    %269 = tpu.reciprocal %268 {approx = true} : vector<8x1xf32> -> vector<8x1xf32>
    %270 = vector.broadcast %269 : vector<8x1xf32> to vector<8x8xf32>
    %271 = arith.mulf %266, %270 : vector<8x8xf32>
    %cst_85 = arith.constant dense<0.000000e+00> : vector<8x8xf32>
    %272 = tpu.matmul %271, %260, %cst_85 {dimension_numbers = #tpu.dot_dimension_numbers<[1], [0], [0], [1], [0, 0, 1, 1], [], []>} : vector<8x8xf32>, vector<8x8xf32>, vector<8x8xf32> -> vector<8x8xf32>
    %273 = vector.extract_strided_slice %240 {offsets = [0, 16], sizes = [8, 8], strides = [1, 1]} : vector<8x32xf32> to vector<8x8xf32>
    %274 = vector.extract_strided_slice %241 {offsets = [0, 16], sizes = [8, 8], strides = [1, 1]} : vector<8x32xf32> to vector<8x8xf32>
    %275 = vector.extract_strided_slice %242 {offsets = [0, 16], sizes = [8, 8], strides = [1, 1]} : vector<8x32xf32> to vector<8x8xf32>
    %cst_86 = arith.constant dense<0.000000e+00> : vector<8x8xf32>
    %276 = tpu.matmul %273, %274, %cst_86 {dimension_numbers = #tpu.dot_dimension_numbers<[1], [1], [0], [0], [0, 0, 1, 0], [], []>} : vector<8x8xf32>, vector<8x8xf32>, vector<8x8xf32> -> vector<8x8xf32>
    %cst_87 = arith.constant dense<0xFF800000> : vector<8xf32>
    %277 = vector.multi_reduction <maximumf>, %276, %cst_87 [1] : vector<8x8xf32> to vector<8xf32>
    %278 = vector.shape_cast %277 : vector<8xf32> to vector<8x1xf32>
    %279 = vector.broadcast %278 : vector<8x1xf32> to vector<8x8xf32>
    %280 = arith.subf %276, %279 : vector<8x8xf32>
    %281 = math.exp %280 : vector<8x8xf32>
    %cst_88 = arith.constant dense<0.000000e+00> : vector<8xf32>
    %282 = vector.multi_reduction <add>, %281, %cst_88 [1] : vector<8x8xf32> to vector<8xf32>
    %283 = vector.shape_cast %282 : vector<8xf32> to vector<8x1xf32>
    %284 = tpu.reciprocal %283 {approx = true} : vector<8x1xf32> -> vector<8x1xf32>
    %285 = vector.broadcast %284 : vector<8x1xf32> to vector<8x8xf32>
    %286 = arith.mulf %281, %285 : vector<8x8xf32>
    %cst_89 = arith.constant dense<0.000000e+00> : vector<8x8xf32>
    %287 = tpu.matmul %286, %275, %cst_89 {dimension_numbers = #tpu.dot_dimension_numbers<[1], [0], [0], [1], [0, 0, 1, 1], [], []>} : vector<8x8xf32>, vector<8x8xf32>, vector<8x8xf32> -> vector<8x8xf32>
    %288 = vector.extract_strided_slice %240 {offsets = [0, 24], sizes = [8, 8], strides = [1, 1]} : vector<8x32xf32> to vector<8x8xf32>
    %289 = vector.extract_strided_slice %241 {offsets = [0, 24], sizes = [8, 8], strides = [1, 1]} : vector<8x32xf32> to vector<8x8xf32>
    %290 = vector.extract_strided_slice %242 {offsets = [0, 24], sizes = [8, 8], strides = [1, 1]} : vector<8x32xf32> to vector<8x8xf32>
    %cst_90 = arith.constant dense<0.000000e+00> : vector<8x8xf32>
    %291 = tpu.matmul %288, %289, %cst_90 {dimension_numbers = #tpu.dot_dimension_numbers<[1], [1], [0], [0], [0, 0, 1, 0], [], []>} : vector<8x8xf32>, vector<8x8xf32>, vector<8x8xf32> -> vector<8x8xf32>
    %cst_91 = arith.constant dense<0xFF800000> : vector<8xf32>
    %292 = vector.multi_reduction <maximumf>, %291, %cst_91 [1] : vector<8x8xf32> to vector<8xf32>
    %293 = vector.shape_cast %292 : vector<8xf32> to vector<8x1xf32>
    %294 = vector.broadcast %293 : vector<8x1xf32> to vector<8x8xf32>
    %295 = arith.subf %291, %294 : vector<8x8xf32>
    %296 = math.exp %295 : vector<8x8xf32>
    %cst_92 = arith.constant dense<0.000000e+00> : vector<8xf32>
    %297 = vector.multi_reduction <add>, %296, %cst_92 [1] : vector<8x8xf32> to vector<8xf32>
    %298 = vector.shape_cast %297 : vector<8xf32> to vector<8x1xf32>
    %299 = tpu.reciprocal %298 {approx = true} : vector<8x1xf32> -> vector<8x1xf32>
    %300 = vector.broadcast %299 : vector<8x1xf32> to vector<8x8xf32>
    %301 = arith.mulf %296, %300 : vector<8x8xf32>
    %cst_93 = arith.constant dense<0.000000e+00> : vector<8x8xf32>
    %302 = tpu.matmul %301, %290, %cst_93 {dimension_numbers = #tpu.dot_dimension_numbers<[1], [0], [0], [1], [0, 0, 1, 1], [], []>} : vector<8x8xf32>, vector<8x8xf32>, vector<8x8xf32> -> vector<8x8xf32>
    %303 = tpu.concatenate %257, %272, %287, %302 in 1 : vector<8x8xf32>, vector<8x8xf32>, vector<8x8xf32>, vector<8x8xf32> -> vector<8x32xf32>
    %304 = tpu.concatenate %239, %303 in 0 : vector<8x32xf32>, vector<8x32xf32> -> vector<16x32xf32>
    %cst_94 = arith.constant dense<0.000000e+00> : vector<16x32xf32>
    %305 = tpu.matmul %304, %5, %cst_94 {dimension_numbers = #tpu.dot_dimension_numbers<[1], [0], [0], [1], [0, 0, 1, 1], [], []>} : vector<16x32xf32>, vector<32x32xf32>, vector<16x32xf32> -> vector<16x32xf32>
    %306 = vector.broadcast %6 : vector<1x32xf32> to vector<16x32xf32>
    %307 = arith.addf %305, %306 : vector<16x32xf32>
    %308 = arith.addf %307, %163 : vector<16x32xf32>
    %c1 = arith.constant 1 : index
    %c0_95 = arith.constant 0 : index
    %c0_96 = arith.constant 0 : index
    %309 = vector.load %arg12[%c1, %c0_95, %c0_96] : memref<3x16x32xf32, #tpu.memory_space<vmem>>, vector<1x16x32xf32>
    %310 = vector.shape_cast %309 : vector<1x16x32xf32> to vector<16x32xf32>
    %311 = arith.mulf %308, %310 : vector<16x32xf32>
    %c1_97 = arith.constant 1 : index
    %c0_98 = arith.constant 0 : index
    %c0_99 = arith.constant 0 : index
    %312 = vector.load %arg13[%c1_97, %c0_98, %c0_99] : memref<3x16x32xf32, #tpu.memory_space<vmem>>, vector<1x16x32xf32>
    %313 = vector.shape_cast %312 : vector<1x16x32xf32> to vector<16x32xf32>
    %314 = arith.addf %311, %313 : vector<16x32xf32>
    %cst_100 = arith.constant dense<0.000000e+00> : vector<16x128xf32>
    %315 = tpu.matmul %314, %7, %cst_100 {dimension_numbers = #tpu.dot_dimension_numbers<[1], [0], [0], [1], [0, 0, 1, 1], [], []>} : vector<16x32xf32>, vector<32x128xf32>, vector<16x128xf32> -> vector<16x128xf32>
    %316 = vector.broadcast %8 : vector<1x128xf32> to vector<16x128xf32>
    %317 = arith.addf %315, %316 : vector<16x128xf32>
    %cst_101 = arith.constant 0.000000e+00 : f32
    %318 = vector.broadcast %cst_101 : f32 to vector<16x128xf32>
    %319 = arith.maximumf %317, %318 : vector<16x128xf32>
    %cst_102 = arith.constant dense<0.000000e+00> : vector<16x32xf32>
    %320 = tpu.matmul %319, %9, %cst_102 {dimension_numbers = #tpu.dot_dimension_numbers<[1], [0], [0], [1], [0, 0, 1, 1], [], []>} : vector<16x128xf32>, vector<128x32xf32>, vector<16x32xf32> -> vector<16x32xf32>
    %321 = vector.broadcast %10 : vector<1x32xf32> to vector<16x32xf32>
    %322 = arith.addf %320, %321 : vector<16x32xf32>
    %323 = arith.addf %322, %314 : vector<16x32xf32>
    %324 = arith.addf %323, %314 : vector<16x32xf32>
    %c2 = arith.constant 2 : index
    %c0_103 = arith.constant 0 : index
    %c0_104 = arith.constant 0 : index
    %325 = vector.load %arg12[%c2, %c0_103, %c0_104] : memref<3x16x32xf32, #tpu.memory_space<vmem>>, vector<1x16x32xf32>
    %326 = vector.shape_cast %325 : vector<1x16x32xf32> to vector<16x32xf32>
    %327 = arith.mulf %324, %326 : vector<16x32xf32>
    %c2_105 = arith.constant 2 : index
    %c0_106 = arith.constant 0 : index
    %c0_107 = arith.constant 0 : index
    %328 = vector.load %arg13[%c2_105, %c0_106, %c0_107] : memref<3x16x32xf32, #tpu.memory_space<vmem>>, vector<1x16x32xf32>
    %329 = vector.shape_cast %328 : vector<1x16x32xf32> to vector<16x32xf32>
    %330 = arith.addf %327, %329 : vector<16x32xf32>
    %c0_108 = arith.constant 0 : index
    %c0_109 = arith.constant 0 : index
    %331 = vector.load %arg14[%c0_108, %c0_109] : memref<16x32xf32, #tpu.memory_space<vmem>>, vector<16x32xf32>
    tpu.vector_store %arg14[%c0_108, %c0_109], %330 {strides = array<i32>} : memref<16x32xf32, #tpu.memory_space<vmem>>, vector<16x32xf32>,
    return
  }
  func.func @transform_0(%arg0: i32) -> (i32, i32) {
    %c0_i32 = arith.constant 0 : i32
    %c0_i32_0 = arith.constant 0 : i32
    %c0_i32_1 = arith.constant 0 : i32
    return %c0_i32, %c0_i32_0 : i32, i32
  }
  func.func @transform_1(%arg0: i32) -> (i32, i32) {
    %c0_i32 = arith.constant 0 : i32
    %c0_i32_0 = arith.constant 0 : i32
    %c0_i32_1 = arith.constant 0 : i32
    return %c0_i32, %c0_i32_0 : i32, i32
  }
  func.func @transform_2(%arg0: i32) -> (i32, i32) {
    %c0_i32 = arith.constant 0 : i32
    %c0_i32_0 = arith.constant 0 : i32
    %c0_i32_1 = arith.constant 0 : i32
    return %c0_i32, %c0_i32_0 : i32, i32
  }
  func.func @transform_3(%arg0: i32) -> (i32, i32) {
    %c0_i32 = arith.constant 0 : i32
    %c0_i32_0 = arith.constant 0 : i32
    %c0_i32_1 = arith.constant 0 : i32
    return %c0_i32, %c0_i32_0 : i32, i32
  }
  func.func @transform_4(%arg0: i32) -> (i32, i32) {
    %c0_i32 = arith.constant 0 : i32
    %c0_i32_0 = arith.constant 0 : i32
    %c0_i32_1 = arith.constant 0 : i32
    return %c0_i32, %c0_i32_0 : i32, i32
  }
  func.func @transform_5(%arg0: i32) -> (i32, i32) {
    %c0_i32 = arith.constant 0 : i32
    %c0_i32_0 = arith.constant 0 : i32
    %c0_i32_1 = arith.constant 0 : i32
    return %c0_i32, %c0_i32_0 : i32, i32
  }
  func.func @transform_6(%arg0: i32) -> (i32, i32) {
    %c0_i32 = arith.constant 0 : i32
    %c0_i32_0 = arith.constant 0 : i32
    %c0_i32_1 = arith.constant 0 : i32
    return %c0_i32, %c0_i32_0 : i32, i32
  }
  func.func @transform_7(%arg0: i32) -> (i32, i32) {
    %c0_i32 = arith.constant 0 : i32
    %c0_i32_0 = arith.constant 0 : i32
    %c0_i32_1 = arith.constant 0 : i32
    return %c0_i32, %c0_i32_0 : i32, i32
  }
  func.func @transform_8(%arg0: i32) -> (i32, i32) {
    %c0_i32 = arith.constant 0 : i32
    %c0_i32_0 = arith.constant 0 : i32
    %c0_i32_1 = arith.constant 0 : i32
    return %c0_i32, %c0_i32_0 : i32, i32
  }
  func.func @transform_9(%arg0: i32) -> (i32, i32) {
    %c0_i32 = arith.constant 0 : i32
    %c0_i32_0 = arith.constant 0 : i32
    %c0_i32_1 = arith.constant 0 : i32
    return %c0_i32, %c0_i32_0 : i32, i32
  }
  func.func @transform_10(%arg0: i32) -> (i32, i32) {
    %c0_i32 = arith.constant 0 : i32
    %c0_i32_0 = arith.constant 0 : i32
    %c0_i32_1 = arith.constant 0 : i32
    return %c0_i32, %c0_i32_0 : i32, i32
  }
  func.func @transform_11(%arg0: i32) -> (i32, i32, i32) {
    %c0_i32 = arith.constant 0 : i32
    %c0_i32_0 = arith.constant 0 : i32
    %c0_i32_1 = arith.constant 0 : i32
    %c0_i32_2 = arith.constant 0 : i32
    return %c0_i32, %c0_i32_0, %c0_i32_1 : i32, i32, i32
  }
  func.func @transform_12(%arg0: i32) -> (i32, i32, i32) {
    %c0_i32 = arith.constant 0 : i32
    %c0_i32_0 = arith.constant 0 : i32
    %c0_i32_1 = arith.constant 0 : i32
    %c0_i32_2 = arith.constant 0 : i32
    return %c0_i32, %c0_i32_0, %c0_i32_1 : i32, i32, i32
  }
  func.func @transform_13(%arg0: i32) -> (i32, i32) {
    %c0_i32 = arith.constant 0 : i32
    %c0_i32_0 = arith.constant 0 : i32
    %c0_i32_1 = arith.constant 0 : i32
    return %c0_i32, %c0_i32_0 : i32, i32
  }
}

</mosaic_0001>

<bundles_post_ra>
// kernel: tpu_custom_call.1
= control target key start
LH: loop header
LB: loop body
LE: loop exit
PB: predicated region body
PF: predicated region fallthrough
CT: control target
= control target key end

     0   :  { %18 = vsyncpa [#allocation3], 0  ;;  %s4987_s0 = inlined_call_operand.hbm [shape: f32[16,32], index: 0, kind: input, shape index: {}]   ;;  %s4988_s1 = inlined_call_operand.hbm [shape: f32[16,32], index: 1, kind: input, shape index: {}]   ;;  %s4989_s2 = inlined_call_operand.hbm [shape: f32[8,8], index: 2, kind: input, shape index: {}]   ;;  %s4990_s3 = inlined_call_operand.vmem [shape: f32[32,96], index: 3, kind: input, shape index: {}]   ;;  %s4991_s4 = inlined_call_operand.vmem [shape: f32[1,96], index: 4, kind: input, shape index: {}]   ;;  %s4992_s5 = inlined_call_operand.vmem [shape: f32[32,32], index: 5, kind: input, shape index: {}]   ;;  %s4993_s6 = inlined_call_operand.vmem [shape: f32[1,32], index: 6, kind: input, shape index: {}]   ;;  %s4994_s7 = inlined_call_operand.hbm [shape: f32[32,128], index: 7, kind: input, shape index: {}]   ;;  %s4995_s8 = inlined_call_operand.hbm [shape: f32[1,128], index: 8, kind: input, shape index: {}]   ;;  %s4996_s9 = inlined_call_operand.vmem [shape: f32[128,32], index: 9, kind: input, shape index: {}]   ;;  %s4997_s10 = inlined_call_operand.vmem [shape: f32[1,32], index: 10, kind: input, shape index: {}]   ;;  %s4998_s11 = inlined_call_operand.vmem [shape: f32[3,16,32], index: 11, kind: input, shape index: {}]   ;;  %s4999_s12 = inlined_call_operand.vmem [shape: f32[3,16,32], index: 12, kind: input, shape index: {}]   ;;  %s5000_s13 = inlined_call_operand.hbm [shape: f32[16,32], index: 13, kind: output, shape index: {}]  }
   0x1   :  { %19 = vsyncpa [#allocation6], 0 }
   0x2   :  { %20 = vsyncpa [#allocation9], 0 }
   0x3   :  { %21 = vsyncpa [#allocation4], 0  ;;  %s4275_s25 = smov [#allocation5]   ;;  %s4276_s27 = smov [#allocation8]  }
   0x4   :  { %s39_s26 = sshll.u32 %s4275_s25, 4  ;;  %s69_s28 = sshll.u32 %s4276_s27, 4  ;;  %s40_s26 = int_to_ptr.vmem [resolvable:$true] %s39_s26  ;;  %s4368_s28 = int_to_ptr.vmem [resolvable:$true] %s69_s28 }
   0x5   :  { %s4135_s14 = scalar_lea.hbm %s4988_s1, 256 }
   0x6   :  { %p4136_p0 = scmp.ne.s32.totalorder %s4988_s1, %s4135_s14  ;;  %p4139_p1 = scmp.lt.u32.totalorder %s4135_s14, %s4988_s1 }
   0x8   :  { %p4141_p2 = pnand %p4139_p1, %p4136_p0 }
   0xa   :  { %4144 = shalt.err (!%p4141_p2)
}
   0xb   :  { %s4145_s19 = scalar_lea.vmem %s40_s26, 256  ;;  %p4150_p4 = scmp.lt.s32.totalorder %s40_s26, %s40_s26 }
   0xc   :  { %p4146_p3 = scmp.ne.s32.totalorder %s40_s26, %s4145_s19  ;;  %p4151_p5 = scmp.lt.s32.totalorder %s4145_s19, %s4145_s19 }
   0xe   :  { %p4152_p6 = por %p4151_p5, %p4150_p4 }
  0x10   :  { %p4153_p7 = pnand %p4152_p6, %p4146_p3 }
  0x12   :  { %4156 = shalt.err (!%p4153_p7)
}
  0x13   :  { %s4277_s20 = smov 128   ;;  %s4278_s21 = smov 8  }
  0x14   :  { %45 = dma.hbm_to_vmem [thread:$0]  %s4988_s1, 256, %s40_s26, [#allocation6], %s4277_s20, %s4277_s20, %s4278_s21  }
  0x15   :  { %s4157_s27 = scalar_lea.hbm %s4994_s7, 512 }
  0x16   :  { %p4158_p8 = scmp.ne.s32.totalorder %s4994_s7, %s4157_s27  ;;  %p4161_p9 = scmp.lt.u32.totalorder %s4157_s27, %s4994_s7 }
  0x18   :  { %p4163_p10 = pnand %p4161_p9, %p4158_p8 }
  0x1a   :  { %4166 = shalt.err (!%p4163_p10)
}
  0x1b   :  { %s4167_s16 = scalar_lea.vmem %s4368_s28, 512  ;;  %p4172_p12 = scmp.lt.s32.totalorder %s4368_s28, %s4368_s28 }
  0x1c   :  { %p4168_p11 = scmp.ne.s32.totalorder %s4368_s28, %s4167_s16  ;;  %p4173_p13 = scmp.lt.s32.totalorder %s4167_s16, %s4167_s16 }
  0x1e   :  { %p4174_p0 = por %p4173_p13, %p4172_p12 }
  0x20   :  { %p4175_p1 = pnand %p4174_p0, %p4168_p11 }
  0x22   :  { %4178 = shalt.err (!%p4175_p1)
}
  0x23   :  { %75 = dma.hbm_to_vmem [thread:$0]  %s4994_s7, 512, %s4368_s28, [#allocation9], %s4277_s20, %s4277_s20, %s4278_s21  }
  0x24   :  { %s4279_s17 = smov [#allocation2]   ;;  %s4280_s19 = smov [#allocation7]  }
  0x25   :  { %s27_s18 = sshll.u32 %s4279_s17, 4  ;;  %s52_s22 = sshll.u32 %s4280_s19, 4  ;;  %s28_s18 = int_to_ptr.vmem [resolvable:$true] %s27_s18  ;;  %s53_s22 = int_to_ptr.vmem [resolvable:$true] %s52_s22 }
  0x26   :  { %s4179_s25 = scalar_lea.hbm %s4987_s0, 256 }
  0x27   :  { %p4180_p2 = scmp.ne.s32.totalorder %s4987_s0, %s4179_s25  ;;  %p4183_p3 = scmp.lt.u32.totalorder %s4179_s25, %s4987_s0 }
  0x29   :  { %p4185_p4 = pnand %p4183_p3, %p4180_p2 }
  0x2b   :  { %4188 = shalt.err (!%p4185_p4)
}
  0x2c   :  { %s4189_s7 = scalar_lea.vmem %s28_s18, 256  ;;  %p4194_p6 = scmp.lt.s32.totalorder %s28_s18, %s28_s18 }
  0x2d   :  { %p4190_p5 = scmp.ne.s32.totalorder %s28_s18, %s4189_s7  ;;  %p4195_p7 = scmp.lt.s32.totalorder %s4189_s7, %s4189_s7 }
  0x2f   :  { %p4196_p8 = por %p4195_p7, %p4194_p6 }
  0x31   :  { %p4197_p9 = pnand %p4196_p8, %p4190_p5 }
  0x33   :  { %4200 = shalt.err (!%p4197_p9)
}
  0x34   :  { %33 = dma.hbm_to_vmem [thread:$0]  %s4987_s0, 256, %s28_s18, [#allocation3], %s4277_s20, %s4277_s20, %s4278_s21  }
  0x35   :  { %s4201_s26 = scalar_lea.hbm %s4989_s2, 128 }
  0x36   :  { %p4202_p10 = scmp.ne.s32.totalorder %s4989_s2, %s4201_s26  ;;  %p4205_p11 = scmp.lt.u32.totalorder %s4201_s26, %s4989_s2 }
  0x38   :  { %p4207_p12 = pnand %p4205_p11, %p4202_p10 }
  0x3a   :  { %4210 = shalt.err (!%p4207_p12)
}
  0x3b   :  { %s4211_s25 = scalar_lea.vmem %s53_s22, 128  ;;  %p4216_p0 = scmp.lt.s32.totalorder %s53_s22, %s53_s22 }
  0x3c   :  { %p4212_p13 = scmp.ne.s32.totalorder %s53_s22, %s4211_s25  ;;  %p4217_p1 = scmp.lt.s32.totalorder %s4211_s25, %s4211_s25 }
  0x3e   :  { %p4218_p2 = por %p4217_p1, %p4216_p0 }
  0x40   :  { %p4219_p3 = pnand %p4218_p2, %p4212_p13 }
  0x42   :  { %4222 = shalt.err (!%p4219_p3)
}
  0x43   :  { %55 = dma.hbm_to_vmem [thread:$0]  %s4989_s2, 128, %s53_s22, [#allocation6]  }
  0x44   :  { %s4281_s27 = smov [#allocation10]   ;;  %s4223_s7 = scalar_lea.hbm %s4995_s8, 16 }
  0x45   :  { %s82_s29 = sshll.u32 %s4281_s27, 4  ;;  %p4224_p4 = scmp.ne.s32.totalorder %s4995_s8, %s4223_s7  ;;  %s83_s29 = int_to_ptr.vmem [resolvable:$true] %s82_s29 }
  0x46   :  { %p4227_p5 = scmp.lt.u32.totalorder %s4223_s7, %s4995_s8 }
  0x48   :  { %p4229_p6 = pnand %p4227_p5, %p4224_p4 }
  0x4a   :  { %4232 = shalt.err (!%p4229_p6)
}
  0x4b   :  { %s4233_s26 = scalar_lea.vmem %s83_s29, 16  ;;  %s4237_s2 = scalar_lea.vmem %s83_s29, 32 }
  0x4c   :  { %p4234_p7 = scmp.ne.s32.totalorder %s83_s29, %s4233_s26  ;;  %p4238_p8 = scmp.lt.s32.totalorder %s83_s29, %s83_s29 }
  0x4d   :  { %p4239_p9 = scmp.lt.s32.totalorder %s4237_s2, %s4233_s26 }
  0x4f   :  { %p4240_p10 = por %p4239_p9, %p4238_p8 }
  0x51   :  { %p4241_p11 = pnand %p4240_p10, %p4234_p7 }
  0x53   :  { %4244 = shalt.err (!%p4241_p11)
}
  0x54   :  { %85 = dma.hbm_to_vmem [thread:$0]  %s4995_s8, 16, %s83_s29, [#allocation9]  }
  0x55   :  { %4267 = dma.done.wait [#allocation3], 256  }
  0x56   :  { %4268 = vsyncadd [#allocation3], 4294967040 }
  0x57   :  { %4269 = dma.done.wait [#allocation6], 384  }
  0x58   :  { %4270 = vsyncadd [#allocation6], 4294966912 }
  0x59   :  { %4271 = dma.done.wait [#allocation9], 528  }
  0x5a   :  { %4272 = vsyncadd [#allocation9], 4294966768  ;;  %vm152_vm0 = vcmask 261120   ;;  %v4447_v0 = vld [vmem:[%s4990_s3] sm:$0xff]  ;;  %v4452_v1 = vld [vmem:[%s4990_s3 + $0x8] sm:$0xff]  ;;  %v4282_v8 = vmov 0.0  }
  0x5b   :  { %v4457_v2 = vld [vmem:[%s4990_s3 + $0x10] sm:$0xff]  ;;  %v4461_v3 = vpack.c.bf16 %v4452_v1, %v4447_v0  ;;  %v4466_v4 = vld [vmem:[%s4990_s3 + $0x18] sm:$0xff]  ;;  %v4468_v5 = vld [vmem:[#allocation2] sm:$0xff]  ;;  %3718 = vmatprep.subr.mxu0 %v4282_v8  ;;  %vm4283_vm1 = vmmov 0   ;;  %s4284_s30 = smov 120   ;;  %s4285_s14 = smov 96  }
  0x5c   :  { %v4472_v6 = vpack.c.bf16 %v4466_v4, %v4457_v2  ;;  %3705 = vmatprep.mubr.msk.f32.mxu1 %vm152_vm0, %v4468_v5  ;;  %v4480_v7 = vld [vmem:[#allocation2 + $0x8] sm:$0xff]  ;;  %3720 = vmatprep.mubr.msk.f32.mxu0 %vm4283_vm1, %v4282_v8  ;;  %v4493_v9 = vld [vmem:[%s4991_s4] ss:$0 sm:$0xff]  ;;  %s4286_s7 = smov 80   ;;  %s4287_s28 = smov 88   ;;  %vm237_vm2 = vcmask 64512  }
  0x5d   :  { %3959 = vmatprep.subr.bf16.mxu1 %v4461_v3  ;;  %s4288_s4 = smov 72   ;;  %s4289_s15 = smov 112   ;;  %v113_v29 = vld [vmem:[#allocation7] sm:$0xff]  ;;  %vm907_vm3 = vcmask 130048   ;;  %vm909_vm4 = vcmask 195584  }
  0x5e   :  { %3961 = vmatpush3.bf16.msra.mxu1 %v4461_v3  ;;  %s4290_s16 = smov 104   ;;  %s4291_s1 = smov 56  }
  0x5f   :  { %3963 = vmatprep.subr.bf16.mxu1 %v4472_v6  ;;  %s4292_s26 = smov 64   ;;  %s4293_s2 = smov 40  }
  0x60   :  { %s4294_s22 = smov 48   ;;  %s4295_s17 = smov 16  }
  0x61   :  { %s4296_s19 = smov 24  }
  0x62   :  { %3965 = vmatpush3.bf16.msra.mxu1 %v4472_v6 }
  0x63   :  { %3708 = vmatprep.subr.mxu1 %v4282_v8 }
  0x65   :  { %3706 = vmatmul.mubr.msk.f32.vlgmr.msra.gmra.mrb[0].mxu1 %vm152_vm0, %v4480_v7 }
  0x66   :  { %3710 = vmatprep.mubr.msk.f32.mxu1 %vm4283_vm1, %v4282_v8 }
 0x138   :  { %v3707_v10 = vpop.f32.mrb[0].mxu1 }
 0x139   :  { %v225_v11 = vpop.f32.mrb[1].mxu1  ;;  %v4511_v13 = vadd.f32 %v3707_v10, %v4493_v9 }
 0x13a   :  { %v4496_v12 = vadd.f32 %v4493_v9, %v225_v11 }
 0x13c   :  { %399 = vrot.lane.b32.xlu1 %v4496_v12, %s4284_s30  ;;  %235 = vrot.lane.b32.xlu0 %v4496_v12, %s4285_s14 }
 0x140   :  { %566 = vrot.lane.b32.xlu1 %v4496_v12, %s4286_s7  ;;  %401 = vrot.lane.b32.xlu0 %v4496_v12, %s4287_s28 }
 0x144   :  { %731 = vrot.lane.b32.xlu1 %v4496_v12, %s4288_s4  ;;  %564 = vrot.lane.b32.xlu0 %v4496_v12, %s4289_s15 }
 0x148   :  { %912 = vrot.lane.b32.xlu1 %v4511_v13, %s4285_s14  ;;  %729 = vrot.lane.b32.xlu0 %v4496_v12, %s4290_s16 }
 0x14c   :  { %1075 = vrot.lane.b32.xlu1 %v4511_v13, %s4284_s30  ;;  %1077 = vrot.lane.b32.xlu0 %v4511_v13, %s4287_s28 }
 0x150   :  { %1240 = vrot.lane.b32.xlu1 %v4511_v13, %s4289_s15  ;;  %1242 = vrot.lane.b32.xlu0 %v4511_v13, %s4286_s7 }
 0x154   :  { %1405 = vrot.lane.b32.xlu1 %v4511_v13, %s4290_s16  ;;  %1407 = vrot.lane.b32.xlu0 %v4511_v13, %s4288_s4 }
 0x158   :  { %488 = vrot.lane.b32.xlu1 %v4496_v12, %s4291_s1  ;;  %323 = vrot.lane.b32.xlu0 %v4496_v12, %s4292_s26 }
 0x1ae   :  { %v400_v14 = vpop.permute.xlu1 %399  ;;  %v236_v15 = vpop.permute.xlu0 %235 }
 0x1af   :  { %3709 = vmatpush3.xpose.msk.msra.mxu1 %vm237_vm2, %v236_v15 }
 0x1b0   :  { %3713 = vmatprep.subr.mxu1 %v4282_v8 }
 0x1b2   :  { %v567_v16 = vpop.permute.xlu1 %566  ;;  %3711 = vmatmul.mubr.msk.f32.vlgmr.msra.gmra.mrb[2].mxu1 %vm237_vm2, %v4496_v12  ;;  %v402_v17 = vpop.permute.xlu0 %401 }
 0x1b3   :  { %3719 = vmatpush3.xpose.msk.msra.mxu0 %vm237_vm2, %v402_v17  ;;  %3715 = vmatprep.mubr.msk.f32.mxu1 %vm4283_vm1, %v4282_v8 }
 0x1b4   :  { %3728 = vmatprep.subr.mxu0 %v4282_v8 }
 0x1b6   :  { %v732_v18 = vpop.permute.xlu1 %731  ;;  %3721 = vmatmul.mubr.msk.f32.vlgmr.msra.gmra.mrb[0].mxu0 %vm237_vm2, %v400_v14  ;;  %v565_v19 = vpop.permute.xlu0 %564 }
 0x1b7   :  { %3729 = vmatpush3.xpose.msk.msra.mxu0 %vm237_vm2, %v567_v16  ;;  %3730 = vmatprep.mubr.msk.f32.mxu0 %vm4283_vm1, %v4282_v8 }
 0x1b8   :  { %3738 = vmatprep.subr.mxu0 %v4282_v8 }
 0x1ba   :  { %3731 = vmatmul.mubr.msk.f32.vlgmr.msra.gmra.mrb[2].mxu0 %vm237_vm2, %v565_v19  ;;  %v730_v20 = vpop.permute.xlu0 %729  ;;  %v913_v21 = vpop.permute.xlu1 %912 }
 0x1bb   :  { %3739 = vmatpush3.xpose.msk.msra.mxu0 %vm237_vm2, %v732_v18  ;;  %3740 = vmatprep.mubr.msk.f32.mxu0 %vm4283_vm1, %v4282_v8 }
 0x1bc   :  { %3748 = vmatprep.subr.mxu0 %v4282_v8 }
 0x1be   :  { %3741 = vmatmul.mubr.msk.f32.vlgmr.msra.gmra.mrb[4].mxu0 %vm237_vm2, %v730_v20  ;;  %v1078_v22 = vpop.permute.xlu0 %1077  ;;  %v1076_v23 = vpop.permute.xlu1 %1075 }
 0x1bf   :  { %3749 = vmatpush3.xpose.msk.msra.mxu0 %vm237_vm2, %v913_v21  ;;  %3750 = vmatprep.mubr.msk.f32.mxu0 %vm4283_vm1, %v4282_v8 }
 0x1c0   :  { %3758 = vmatprep.subr.mxu0 %v4282_v8 }
 0x1c2   :  { %3751 = vmatmul.mubr.msk.f32.vlgmr.msra.gmra.mrb[6].mxu0 %vm237_vm2, %v4511_v13  ;;  %v1243_v24 = vpop.permute.xlu0 %1242  ;;  %v1241_v26 = vpop.permute.xlu1 %1240 }
 0x1c3   :  { %3759 = vmatpush3.xpose.msk.msra.mxu0 %vm237_vm2, %v1078_v22  ;;  %3760 = vmatprep.mubr.msk.f32.mxu0 %vm4283_vm1, %v4282_v8 }
 0x1c4   :  { %3768 = vmatprep.subr.mxu0 %v4282_v8 }
 0x1c6   :  { %3761 = vmatmul.mubr.msk.f32.vlgmr.msra.gmra.mrb[8].mxu0 %vm237_vm2, %v1076_v23  ;;  %v1408_v25 = vpop.permute.xlu0 %1407  ;;  %v1406_v28 = vpop.permute.xlu1 %1405 }
 0x1c7   :  { %3769 = vmatpush3.xpose.msk.msra.mxu0 %vm237_vm2, %v1243_v24  ;;  %3770 = vmatprep.mubr.msk.f32.mxu0 %vm4283_vm1, %v4282_v8 }
 0x1c8   :  { %3778 = vmatprep.subr.mxu0 %v4282_v8 }
 0x1ca   :  { %3771 = vmatmul.mubr.msk.f32.vlgmr.msra.gmra.mrb[10].mxu0 %vm237_vm2, %v1241_v26  ;;  %v324_v27 = vpop.permute.xlu0 %323  ;;  %v4585_v62 = vpop.permute.xlu1 %488 }
 0x1cb   :  { %3714 = vmatpush3.msra.mxu1 %v324_v27  ;;  %3779 = vmatpush3.xpose.msk.msra.mxu0 %vm237_vm2, %v1408_v25 }
 0x1cc   :  { %3780 = vmatprep.mubr.msk.f32.mxu0 %vm4283_vm1, %v4282_v8  ;;  %3723 = vmatprep.subr.mxu1 %v4282_v8 }
 0x1ce   :  { %3781 = vmatmul.mubr.msk.f32.vlgmr.msra.gmra.mrb[12].mxu0 %vm237_vm2, %v1406_v28 }
 0x285   :  { %v308_v30 = vpop.f32.mrb[2].mxu1 }
 0x286   :  { %v309_v31 = vadd.f32 %v308_v30, %v113_v29  ;;  %v3712_v32 = vpop.f32.mrb[3].mxu1 }
 0x288   :  { %v312_v33 = vsel %vm237_vm2, %v309_v31, -inf }
 0x289   :  { %313 = vmax.xlane.f32.xlu0 %v312_v33  ;;  %v473_v34 = vpop.f32.mrb[0].mxu0 }
 0x28a   :  { %v474_v35 = vadd.f32 %v473_v34, %v113_v29  ;;  %v3722_v36 = vpop.f32.mrb[1].mxu0 }
 0x28c   :  { %v477_v37 = vsel %vm237_vm2, %v474_v35, -inf }
 0x28d   :  { %478 = vmax.xlane.f32.xlu1 %v477_v37  ;;  %v638_v38 = vpop.f32.mrb[2].mxu0 }
 0x28e   :  { %v639_v39 = vadd.f32 %v638_v38, %v113_v29  ;;  %v3732_v40 = vpop.f32.mrb[3].mxu0 }
 0x290   :  { %v642_v41 = vsel %vm237_vm2, %v639_v39, -inf }
 0x291   :  { %643 = vmax.xlane.f32.xlu0 %v642_v41  ;;  %v803_v42 = vpop.f32.mrb[4].mxu0 }
 0x292   :  { %v804_v43 = vadd.f32 %v803_v42, %v113_v29  ;;  %v3742_v44 = vpop.f32.mrb[5].mxu0 }
 0x294   :  { %v807_v45 = vsel %vm237_vm2, %v804_v43, -inf }
 0x295   :  { %808 = vmax.xlane.f32.xlu0 %v807_v45  ;;  %v984_v46 = vpop.f32.mrb[6].mxu0 }
 0x296   :  { %v985_v47 = vadd.f32 %v984_v46, %v113_v29  ;;  %v3752_v48 = vpop.f32.mrb[7].mxu0 }
 0x298   :  { %v988_v49 = vsel %vm237_vm2, %v985_v47, -inf }
 0x299   :  { %989 = vmax.xlane.f32.xlu1 %v988_v49  ;;  %v1149_v50 = vpop.f32.mrb[8].mxu0 }
 0x29a   :  { %v1150_v51 = vadd.f32 %v1149_v50, %v113_v29  ;;  %v3762_v52 = vpop.f32.mrb[9].mxu0 }
 0x29c   :  { %v1153_v53 = vsel %vm237_vm2, %v1150_v51, -inf }
 0x29d   :  { %1154 = vmax.xlane.f32.xlu0 %v1153_v53  ;;  %v1314_v54 = vpop.f32.mrb[10].mxu0 }
 0x29e   :  { %v1315_v55 = vadd.f32 %v1314_v54, %v113_v29  ;;  %v3772_v56 = vpop.f32.mrb[11].mxu0 }
 0x2a0   :  { %v1318_v57 = vsel %vm237_vm2, %v1315_v55, -inf }
 0x2a1   :  { %1319 = vmax.xlane.f32.xlu1 %v1318_v57  ;;  %v1479_v58 = vpop.f32.mrb[12].mxu0 }
 0x2a2   :  { %v1480_v59 = vadd.f32 %v1479_v58, %v113_v29  ;;  %v3782_v60 = vpop.f32.mrb[13].mxu0 }
 0x2a4   :  { %v1483_v61 = vsel %vm237_vm2, %v1480_v59, -inf }
 0x2a5   :  { %1484 = vmax.xlane.f32.xlu0 %v1483_v61 }
 0x2b2   :  { %818 = vrot.lane.b32.xlu1 %v4496_v12, %s4293_s2 }
 0x2bb   :  { %653 = vrot.lane.b32.xlu0 %v4496_v12, %s4294_s22 }
 0x316   :  { %v314_v63 = vpop.xlane.xlu0 %313 }
 0x317   :  { %v315_v10 = vsub.f32 %v309_v31, %v314_v63 }
 0x319   :  { %v316_v11 = vmul.f32 1.442695, %v315_v10 }
 0x31a   :  { %v479_v14 = vpop.xlane.xlu1 %478 }
 0x31b   :  { %4071 = vpow2.f32 %v316_v11  ;;  %v480_v15 = vsub.f32 %v474_v35, %v479_v14 }
 0x31d   :  { %v481_v16 = vmul.f32 1.442695, %v480_v15 }
 0x31e   :  { %v644_v17 = vpop.xlane.xlu0 %643 }
 0x31f   :  { %4073 = vpow2.f32 %v481_v16  ;;  %v645_v18 = vsub.f32 %v639_v39, %v644_v17 }
 0x321   :  { %v646_v19 = vmul.f32 1.442695, %v645_v18 }
 0x322   :  { %v809_v20 = vpop.xlane.xlu0 %808 }
 0x323   :  { %4075 = vpow2.f32 %v646_v19  ;;  %v810_v21 = vsub.f32 %v804_v43, %v809_v20 }
 0x325   :  { %v4072_v22 = vpop.eup %4071  ;;  %v811_v23 = vmul.f32 1.442695, %v810_v21 }
 0x326   :  { %v318_v12 = vsel %vm237_vm2, %v4072_v22, 0.0  ;;  %v990_v30 = vpop.xlane.xlu1 %989 }
 0x327   :  { %4077 = vpow2.f32 %v811_v23  ;;  %319 = vadd.xlane.f32.xlu1 %v318_v12  ;;  %v991_v31 = vsub.f32 %v985_v47, %v990_v30 }
 0x329   :  { %v4074_v24 = vpop.eup %4073  ;;  %v992_v35 = vmul.f32 1.442695, %v991_v31 }
 0x32a   :  { %v483_v25 = vsel %vm237_vm2, %v4074_v24, 0.0  ;;  %v1155_v32 = vpop.xlane.xlu0 %1154 }
 0x32b   :  { %484 = vadd.xlane.f32.xlu0 %v483_v25  ;;  %v1156_v34 = vsub.f32 %v1150_v51, %v1155_v32  ;;  %4079 = vpow2.f32 %v992_v35  ;;  %v120_v35 = vld [vmem:[%s4992_s5 + $0x8] sm:$0xff] }
 0x32d   :  { %v4076_v26 = vpop.eup %4075  ;;  %v1157_v38 = vmul.f32 1.442695, %v1156_v34  ;;  %v119_v34 = vld [vmem:[%s4992_s5] sm:$0xff] }
 0x32e   :  { %v648_v27 = vsel %vm237_vm2, %v4076_v26, 0.0  ;;  %v1320_v33 = vpop.xlane.xlu1 %1319 }
 0x32f   :  { %649 = vadd.xlane.f32.xlu1 %v648_v27  ;;  %v1321_v36 = vsub.f32 %v1315_v55, %v1320_v33  ;;  %4081 = vpow2.f32 %v1157_v38  ;;  %v122_v38 = vld [vmem:[%s4992_s5 + $0x18] sm:$0xff] }
 0x331   :  { %v4590_v28 = vpop.eup %4077  ;;  %v1322_v39 = vmul.f32 1.442695, %v1321_v36  ;;  %v4657_v36 = vpack.c.bf16 %v120_v35, %v119_v34 }
 0x332   :  { %v813_v29 = vsel %vm237_vm2, %v4590_v28, 0.0  ;;  %v1485_v37 = vpop.xlane.xlu0 %1484  ;;  %v819_v50 = vpop.permute.xlu1 %818 }
 0x333   :  { %814 = vadd.xlane.f32.xlu0 %v813_v29  ;;  %v1486_v40 = vsub.f32 %v1480_v59, %v1485_v37  ;;  %4083 = vpow2.f32 %v1322_v39  ;;  %v121_v37 = vld [vmem:[%s4992_s5 + $0x10] sm:$0xff] }
 0x334   :  { %v4667_v39 = vpack.c.bf16 %v122_v38, %v121_v37 }
 0x335   :  { %v1487_v41 = vmul.f32 1.442695, %v1486_v40  ;;  %v4080_v42 = vpop.eup %4079 }
 0x336   :  { %v994_v44 = vsel %vm237_vm2, %v4080_v42, 0.0  ;;  %v654_v51 = vpop.permute.xlu0 %653 }
 0x337   :  { %4085 = vpow2.f32 %v1487_v41 }
 0x339   :  { %v4598_v43 = vpop.eup %4081 }
 0x33a   :  { %v1159_v47 = vsel %vm237_vm2, %v4598_v43, 0.0 }
 0x33d   :  { %v4601_v45 = vpop.eup %4083 }
 0x33e   :  { %v1324_v46 = vsel %vm237_vm2, %v4601_v45, 0.0 }
 0x340   :  { %1164 = vrot.lane.b32.xlu1 %v4511_v13, %s4291_s1 }
 0x341   :  { %v4607_v48 = vpop.eup %4085 }
 0x342   :  { %v1489_v49 = vsel %vm237_vm2, %v4607_v48, 0.0 }
 0x349   :  { %999 = vrot.lane.b32.xlu0 %v4511_v13, %s4292_s26 }
 0x364   :  { %995 = vadd.xlane.f32.xlu1 %v994_v44 }
 0x368   :  { %1325 = vadd.xlane.f32.xlu1 %v1324_v46  ;;  %1160 = vadd.xlane.f32.xlu0 %v1159_v47  ;;  %v4061_v46 = vpack.i.bf16 %v4452_v1, %v4447_v0  ;;  %v111_v47 = vld [vmem:[#allocation5] sm:$0xff] }
 0x369   :  { %3818 = vmatprep.mubr.msk.f32.mxu0 %vm152_vm0, %v111_v47 }
 0x36c   :  { %1490 = vadd.xlane.f32.xlu1 %v1489_v49 }
 0x37d   :  { %1494 = vrot.lane.b32.xlu1 %v4511_v13, %s4293_s2 }
 0x37e   :  { %1329 = vrot.lane.b32.xlu0 %v4511_v13, %s4294_s22 }
 0x3b4   :  { %v320_v52 = vpop.xlane.xlu1 %319 }
 0x3b5   :  { %4087 = vrcp.f32 %v320_v52 }
 0x3b8   :  { %v485_v53 = vpop.xlane.xlu0 %484 }
 0x3b9   :  { %4089 = vrcp.f32 %v485_v53 }
 0x3bc   :  { %v650_v54 = vpop.xlane.xlu1 %649 }
 0x3bd   :  { %4091 = vrcp.f32 %v650_v54 }
 0x3bf   :  { %v4088_v55 = vpop.eup %4087 }
 0x3c0   :  { %v322_v56 = vmul.f32 %v4088_v55, %v4072_v22  ;;  %v815_v57 = vpop.xlane.xlu0 %814  ;;  %v1165_v10 = vpop.permute.xlu1 %1164 }
 0x3c1   :  { %4093 = vrcp.f32 %v815_v57 }
 0x3c2   :  { %3716 = vmatmul.mubr.msk.f32.vlgmr.msra.gmra.mrb[4].mxu1 %vm237_vm2, %v322_v56 }
 0x3c3   :  { %v4090_v58 = vpop.eup %4089  ;;  %3724 = vmatpush3.msra.mxu1 %v4585_v62  ;;  %3725 = vmatprep.mubr.msk.f32.mxu1 %vm4283_vm1, %v4282_v8 }
 0x3c4   :  { %v487_v13 = vmul.f32 %v4090_v58, %v4074_v24  ;;  %3733 = vmatprep.subr.mxu1 %v4282_v8  ;;  %v1000_v63 = vpop.permute.xlu0 %999 }
 0x3c6   :  { %3726 = vmatmul.mubr.msk.f32.vlgmr.msra.gmra.mrb[6].mxu1 %vm237_vm2, %v487_v13 }
 0x3c7   :  { %v4092_v59 = vpop.eup %4091  ;;  %3734 = vmatpush3.msra.mxu1 %v654_v51  ;;  %3735 = vmatprep.mubr.msk.f32.mxu1 %vm4283_vm1, %v4282_v8 }
 0x3c8   :  { %v652_v60 = vmul.f32 %v4092_v59, %v4076_v26  ;;  %3743 = vmatprep.subr.mxu1 %v4282_v8 }
 0x3ca   :  { %3736 = vmatmul.mubr.msk.f32.vlgmr.msra.gmra.mrb[8].mxu1 %vm237_vm2, %v652_v60 }
 0x3cb   :  { %v4094_v61 = vpop.eup %4093  ;;  %3744 = vmatpush3.msra.mxu1 %v819_v50  ;;  %3745 = vmatprep.mubr.msk.f32.mxu1 %vm4283_vm1, %v4282_v8  ;;  %v4066_v50 = vpack.i.bf16 %v4466_v4, %v4457_v2 }
 0x3cc   :  { %v817_v62 = vmul.f32 %v4094_v61, %v4590_v28  ;;  %3753 = vmatprep.subr.mxu1 %v4282_v8 }
 0x3ce   :  { %3746 = vmatmul.mubr.msk.f32.vlgmr.msra.gmra.mrb[10].mxu1 %vm237_vm2, %v817_v62 }
 0x3cf   :  { %3754 = vmatpush3.msra.mxu1 %v1000_v63  ;;  %3755 = vmatprep.mubr.msk.f32.mxu1 %vm4283_vm1, %v4282_v8 }
 0x3d0   :  { %3763 = vmatprep.subr.mxu1 %v4282_v8 }
 0x3f1   :  { %v996_v11 = vpop.xlane.xlu1 %995 }
 0x3f2   :  { %4095 = vrcp.f32 %v996_v11 }
 0x3f5   :  { %v1326_v14 = vpop.xlane.xlu1 %1325  ;;  %v1161_v15 = vpop.xlane.xlu0 %1160 }
 0x3f6   :  { %4097 = vrcp.f32 %v1161_v15 }
 0x3f7   :  { %4099 = vrcp.f32 %v1326_v14  ;;  %v112_v14 = vld [vmem:[#allocation5 + $0x8] sm:$0xff] }
 0x3f9   :  { %v1491_v16 = vpop.xlane.xlu1 %1490  ;;  %v1330_v22 = vpop.permute.xlu0 %1329 }
 0x3fa   :  { %4101 = vrcp.f32 %v1491_v16 }
 0x3fc   :  { %v4096_v17 = vpop.eup %4095 }
 0x3fd   :  { %v998_v18 = vmul.f32 %v4096_v17, %v4080_v42  ;;  %v1495_v24 = vpop.permute.xlu1 %1494  ;;  %v1675_v17 = vld [vmem:[%s4998_s11 + $0x8] sm:$0xff] }
 0x3ff   :  { %3756 = vmatmul.mubr.msk.f32.vlgmr.msra.gmra.mrb[12].mxu1 %vm237_vm2, %v998_v18 }
 0x400   :  { %3764 = vmatpush3.msra.mxu1 %v1165_v10  ;;  %3765 = vmatprep.mubr.msk.f32.mxu1 %vm4283_vm1, %v4282_v8  ;;  %v4098_v19 = vpop.eup %4097 }
 0x401   :  { %3773 = vmatprep.subr.mxu1 %v4282_v8  ;;  %v1163_v20 = vmul.f32 %v4098_v19, %v4598_v43  ;;  %v4100_v21 = vpop.eup %4099 }
 0x402   :  { %v1328_v23 = vmul.f32 %v4100_v21, %v4601_v45 }
 0x403   :  { %3766 = vmatmul.mubr.msk.f32.vlgmr.msra.gmra.mrb[14].mxu1 %vm237_vm2, %v1163_v20  ;;  %v1674_v20 = vld [vmem:[%s4998_s11] sm:$0xff] }
 0x404   :  { %3774 = vmatpush3.msra.mxu1 %v1330_v22  ;;  %3775 = vmatprep.mubr.msk.f32.mxu1 %vm4283_vm1, %v4282_v8  ;;  %v4102_v12 = vpop.eup %4101 }
 0x405   :  { %3783 = vmatprep.subr.mxu1 %v4282_v8  ;;  %v1493_v25 = vmul.f32 %v4102_v12, %v4607_v48  ;;  %v1679_v12 = vld [vmem:[%s4999_s12 + $0x8] sm:$0xff] }
 0x407   :  { %3776 = vmatmul.mubr.msk.f32.vlgmr.msra.gmra.mrb[16].mxu1 %vm237_vm2, %v1328_v23  ;;  %v1678_v23 = vld [vmem:[%s4999_s12] sm:$0xff] }
 0x408   :  { %3784 = vmatpush3.msra.mxu1 %v1495_v24  ;;  %3785 = vmatprep.mubr.msk.f32.mxu1 %vm4283_vm1, %v4282_v8 }
 0x409   :  { %3967 = vmatprep.subr.bf16.mxu1 %v4657_v36 }
 0x40b   :  { %3786 = vmatmul.mubr.msk.f32.vlgmr.msra.gmra.mrb[18].mxu1 %vm237_vm2, %v1493_v25 }
 0x40c   :  { %3969 = vmatpush3.bf16.msra.mxu1 %v4657_v36 }
 0x40d   :  { %3971 = vmatprep.subr.bf16.mxu1 %v4667_v39 }
 0x410   :  { %3973 = vmatpush3.bf16.msra.mxu1 %v4667_v39 }
 0x411   :  { %3975 = vmatprep.subr.bf16.mxu1 %v4461_v3 }
 0x495   :  { %v395_v26 = vpop.f32.mrb[4].mxu1 }
 0x496   :  { %v3717_v27 = vpop.f32.mrb[5].mxu1 }
 0x499   :  { %v560_v28 = vpop.f32.mrb[6].mxu1 }
 0x49a   :  { %895 = vrot.lane.b32.xlu0 %v560_v28, %s4278_s21  ;;  %v3727_v29 = vpop.f32.mrb[7].mxu1 }
 0x49d   :  { %v725_v30 = vpop.f32.mrb[8].mxu1 }
 0x49e   :  { %899 = vrot.lane.b32.xlu1 %v725_v30, %s4295_s17  ;;  %v3737_v31 = vpop.f32.mrb[9].mxu1 }
 0x4a1   :  { %v890_v32 = vpop.f32.mrb[10].mxu1 }
 0x4a2   :  { %903 = vrot.lane.b32.xlu1 %v890_v32, %s4296_s19  ;;  %v3747_v33 = vpop.f32.mrb[11].mxu1 }
 0x4d2   :  { %v1071_v40 = vpop.f32.mrb[12].mxu1 }
 0x4d3   :  { %v3757_v41 = vpop.f32.mrb[13].mxu1 }
 0x4d6   :  { %v1236_v42 = vpop.f32.mrb[14].mxu1 }
 0x4d7   :  { %1571 = vrot.lane.b32.xlu0 %v1236_v42, %s4278_s21  ;;  %v3767_v43 = vpop.f32.mrb[15].mxu1 }
 0x4da   :  { %v1401_v44 = vpop.f32.mrb[16].mxu1 }
 0x4db   :  { %1575 = vrot.lane.b32.xlu0 %v1401_v44, %s4295_s17  ;;  %v3777_v45 = vpop.f32.mrb[17].mxu1 }
 0x4de   :  { %v1566_v48 = vpop.f32.mrb[18].mxu1 }
 0x4df   :  { %1579 = vrot.lane.b32.xlu1 %v1566_v48, %s4296_s19  ;;  %v3787_v49 = vpop.f32.mrb[19].mxu1  ;;  %4062 = vrot.lane.b32.xlu0 %v4061_v46, %s4285_s14 }
 0x4e3   :  { %4067 = vrot.lane.b32.xlu1 %v4066_v50, %s4285_s14  ;;  %1779 = vrot.lane.b32.xlu0 %v4493_v9, %s4285_s14 }
 0x50c   :  { %v896_v51 = vpop.permute.xlu0 %895 }
 0x50d   :  { %v906_v0 = vsel %vm237_vm2, %v395_v26, %v896_v51 }
 0x510   :  { %v900_v52 = vpop.permute.xlu1 %899 }
 0x511   :  { %v908_v1 = vsel %vm907_vm3, %v906_v0, %v900_v52 }
 0x514   :  { %v904_v53 = vpop.permute.xlu1 %903 }
 0x515   :  { %v910_v54 = vsel %vm909_vm4, %v908_v1, %v904_v53 }
 0x516   :  { %3796 = vmatprep.mubr.msk.f32.mxu1 %vm152_vm0, %v910_v54 }
 0x549   :  { %v1572_v55 = vpop.permute.xlu0 %1571 }
 0x54a   :  { %v1582_v4 = vsel %vm237_vm2, %v1071_v40, %v1572_v55 }
 0x54d   :  { %v1576_v2 = vpop.permute.xlu0 %1575 }
 0x54e   :  { %v1583_v56 = vsel %vm907_vm3, %v1582_v4, %v1576_v2 }
 0x551   :  { %v1580_v57 = vpop.permute.xlu1 %1579  ;;  %v4063_v58 = vpop.permute.xlu0 %4062 }
 0x552   :  { %v1584_v13 = vsel %vm909_vm4, %v1583_v56, %v1580_v57  ;;  %v4065_v59 = vunpack.i.h.bf16 %v4063_v58  ;;  %v4064_v60 = vunpack.i.l.bf16 %v4063_v58 }
 0x553   :  { %3797 = vmatmul.mubr.msk.f32.vlgmr.msra.gmra.mrb[20].mxu1 %vm152_vm0, %v1584_v13 }
 0x554   :  { %v3982_v61 = vpack.c.bf16 %v4065_v59, %v4064_v60  ;;  %3977 = vmatpush3.bf16.msra.mxu1 %v4461_v3  ;;  %v4703_v3 = vld [vmem:[%s4993_s6] ss:$0 sm:$0xff] }
 0x555   :  { %v4068_v62 = vpop.permute.xlu1 %4067  ;;  %3979 = vmatprep.subr.bf16.mxu1 %v4472_v6 }
 0x556   :  { %v4070_v63 = vunpack.i.h.bf16 %v4068_v62  ;;  %v4069_v10 = vunpack.i.l.bf16 %v4068_v62  ;;  %3983 = vmatprep.subr.bf16.mxu0 %v3982_v61 }
 0x557   :  { %3985 = vmatpush3.bf16.msra.mxu0 %v3982_v61 }
 0x558   :  { %v3986_v11 = vpack.c.bf16 %v4070_v63, %v4069_v10  ;;  %3981 = vmatpush3.bf16.msra.mxu1 %v4472_v6 }
 0x559   :  { %3821 = vmatprep.subr.mxu1 %v4282_v8 }
 0x55a   :  { %3987 = vmatprep.subr.bf16.mxu0 %v3986_v11 }
 0x55b   :  { %3989 = vmatpush3.bf16.msra.mxu0 %v3986_v11 }
 0x55c   :  { %3831 = vmatprep.subr.mxu0 %v4282_v8 }
 0x55e   :  { %3819 = vmatmul.mubr.msk.f32.vlgmr.msra.gmra.mrb[14].mxu0 %vm152_vm0, %v112_v14 }
 0x55f   :  { %3833 = vmatprep.mubr.msk.f32.mxu0 %vm4283_vm1, %v4282_v8 }
 0x626   :  { %v3798_v15 = vpop.f32.mrb[20].mxu1 }
 0x627   :  { %v1669_v6 = vadd.f32 %v3798_v15, %v4703_v3  ;;  %v1663_v16 = vpop.f32.mrb[21].mxu1 }
 0x628   :  { %v1664_v18 = vadd.f32 %v4703_v3, %v1663_v16 }
 0x629   :  { %v1673_v19 = vadd.f32 %v1669_v6, %v4480_v7  ;;  %v1780_v7 = vpop.permute.xlu0 %1779 }
 0x62a   :  { %v1672_v21 = vadd.f32 %v1664_v18, %v4468_v5 }
 0x62b   :  { %v1677_v22 = vmul.f32 %v1675_v17, %v1673_v19 }
 0x62c   :  { %v1676_v24 = vmul.f32 %v1674_v20, %v1672_v21 }
 0x62d   :  { %v4723_v26 = vadd.f32 %v1679_v12, %v1677_v22 }
 0x62e   :  { %v4721_v25 = vadd.f32 %v1678_v23, %v1676_v24 }
 0x630   :  { %3807 = vmatprep.mubr.msk.f32.mxu1 %vm152_vm0, %v4721_v25 }
 0x631   :  { %3808 = vmatmul.mubr.msk.f32.vlgmr.msra.gmra.mrb[22].mxu1 %vm152_vm0, %v4723_v26  ;;  %v3820_v5 = vpop.f32.mrb[14].mxu0 }
 0x632   :  { %v1854_v27 = vpop.f32.mrb[15].mxu0  ;;  %3823 = vmatprep.mubr.msk.f32.mxu1 %vm4283_vm1, %v4282_v8  ;;  %v4740_v29 = vadd.f32 %v3820_v5, %v1780_v7 }
 0x633   :  { %v4731_v28 = vadd.f32 %v1854_v27, %v1780_v7 }
 0x635   :  { %2028 = vrot.lane.b32.xlu1 %v4731_v28, %s4284_s30  ;;  %3822 = vmatpush3.xpose.msk.msra.mxu1 %vm237_vm2, %v4731_v28 }
 0x636   :  { %3826 = vmatprep.subr.mxu1 %v4282_v8 }
 0x639   :  { %2193 = vrot.lane.b32.xlu1 %v4731_v28, %s4289_s15 }
 0x63d   :  { %2358 = vrot.lane.b32.xlu1 %v4731_v28, %s4290_s16 }
 0x641   :  { %2701 = vrot.lane.b32.xlu1 %v4740_v29, %s4284_s30 }
 0x645   :  { %2866 = vrot.lane.b32.xlu1 %v4740_v29, %s4289_s15 }
 0x649   :  { %3031 = vrot.lane.b32.xlu1 %v4740_v29, %s4290_s16 }
 0x64d   :  { %1950 = vrot.lane.b32.xlu1 %v4731_v28, %s4285_s14 }
 0x6a7   :  { %v2029_v30 = vpop.permute.xlu1 %2028 }
 0x6a8   :  { %3832 = vmatpush3.xpose.msk.msra.mxu0 %vm237_vm2, %v2029_v30 }
 0x6a9   :  { %3841 = vmatprep.subr.mxu0 %v4282_v8 }
 0x6ab   :  { %v2194_v31 = vpop.permute.xlu1 %2193 }
 0x6af   :  { %v2359_v32 = vpop.permute.xlu1 %2358 }
 0x6b3   :  { %v2702_v33 = vpop.permute.xlu1 %2701 }
 0x6b7   :  { %v2867_v34 = vpop.permute.xlu1 %2866 }
 0x6bb   :  { %v3032_v35 = vpop.permute.xlu1 %3031 }
 0x6bf   :  { %v1951_v41 = vpop.permute.xlu1 %1950 }
 0x704   :  { %v3809_v37 = vpop.f32.mrb[22].mxu1 }
 0x705   :  { %v1754_v38 = vpop.f32.mrb[23].mxu1  ;;  %v1760_v42 = vadd.f32 %v3809_v37, %v4493_v9 }
 0x706   :  { %v1755_v40 = vadd.f32 %v4493_v9, %v1754_v38 }
 0x708   :  { %2026 = vrot.lane.b32.xlu0 %v1755_v40, %s4284_s30  ;;  %3824 = vmatmul.mubr.msk.f32.vlgmr.msra.gmra.mrb[24].mxu1 %vm237_vm2, %v1755_v40 }
 0x709   :  { %3827 = vmatpush3.msra.mxu1 %v1951_v41  ;;  %3828 = vmatprep.mubr.msk.f32.mxu1 %vm4283_vm1, %v4282_v8 }
 0x70a   :  { %3836 = vmatprep.subr.mxu1 %v4282_v8 }
 0x70c   :  { %2191 = vrot.lane.b32.xlu0 %v1755_v40, %s4289_s15 }
 0x710   :  { %2356 = vrot.lane.b32.xlu0 %v1755_v40, %s4290_s16 }
 0x714   :  { %2699 = vrot.lane.b32.xlu0 %v1760_v42, %s4284_s30  ;;  %s4297_s30 = smov [#allocation11]  }
 0x718   :  { %2864 = vrot.lane.b32.xlu0 %v1760_v42, %s4289_s15 }
 0x71c   :  { %3029 = vrot.lane.b32.xlu0 %v1760_v42, %s4290_s16 }
 0x77a   :  { %v2027_v43 = vpop.permute.xlu0 %2026 }
 0x77b   :  { %3834 = vmatmul.mubr.msk.f32.vlgmr.msra.gmra.mrb[16].mxu0 %vm237_vm2, %v2027_v43 }
 0x77c   :  { %3842 = vmatpush3.xpose.msk.msra.mxu0 %vm237_vm2, %v2194_v31  ;;  %3843 = vmatprep.mubr.msk.f32.mxu0 %vm4283_vm1, %v4282_v8 }
 0x77d   :  { %3851 = vmatprep.subr.mxu0 %v4282_v8 }
 0x77e   :  { %v2192_v44 = vpop.permute.xlu0 %2191 }
 0x77f   :  { %3844 = vmatmul.mubr.msk.f32.vlgmr.msra.gmra.mrb[18].mxu0 %vm237_vm2, %v2192_v44 }
 0x780   :  { %3852 = vmatpush3.xpose.msk.msra.mxu0 %vm237_vm2, %v2359_v32  ;;  %3853 = vmatprep.mubr.msk.f32.mxu0 %vm4283_vm1, %v4282_v8 }
 0x781   :  { %3861 = vmatprep.subr.mxu0 %v4282_v8 }
 0x782   :  { %v2357_v9 = vpop.permute.xlu0 %2356 }
 0x783   :  { %3854 = vmatmul.mubr.msk.f32.vlgmr.msra.gmra.mrb[20].mxu0 %vm237_vm2, %v2357_v9 }
 0x784   :  { %3862 = vmatpush3.xpose.msk.msra.mxu0 %vm237_vm2, %v4740_v29  ;;  %3863 = vmatprep.mubr.msk.f32.mxu0 %vm4283_vm1, %v4282_v8 }
 0x785   :  { %3871 = vmatprep.subr.mxu0 %v4282_v8 }
 0x786   :  { %v2700_v45 = vpop.permute.xlu0 %2699 }
 0x787   :  { %3864 = vmatmul.mubr.msk.f32.vlgmr.msra.gmra.mrb[22].mxu0 %vm237_vm2, %v1760_v42 }
 0x788   :  { %3872 = vmatpush3.xpose.msk.msra.mxu0 %vm237_vm2, %v2702_v33  ;;  %3873 = vmatprep.mubr.msk.f32.mxu0 %vm4283_vm1, %v4282_v8 }
 0x789   :  { %3881 = vmatprep.subr.mxu0 %v4282_v8 }
 0x78a   :  { %v2865_v46 = vpop.permute.xlu0 %2864 }
 0x78b   :  { %3874 = vmatmul.mubr.msk.f32.vlgmr.msra.gmra.mrb[24].mxu0 %vm237_vm2, %v2700_v45 }
 0x78c   :  { %3882 = vmatpush3.xpose.msk.msra.mxu0 %vm237_vm2, %v2867_v34  ;;  %3883 = vmatprep.mubr.msk.f32.mxu0 %vm4283_vm1, %v4282_v8 }
 0x78d   :  { %3891 = vmatprep.subr.mxu0 %v4282_v8 }
 0x78e   :  { %v3030_v47 = vpop.permute.xlu0 %3029 }
 0x78f   :  { %3884 = vmatmul.mubr.msk.f32.vlgmr.msra.gmra.mrb[26].mxu0 %vm237_vm2, %v2865_v46 }
 0x790   :  { %3892 = vmatpush3.xpose.msk.msra.mxu0 %vm237_vm2, %v3032_v35  ;;  %3893 = vmatprep.mubr.msk.f32.mxu0 %vm4283_vm1, %v4282_v8 }
 0x791   :  { %3991 = vmatprep.subr.bf16.mxu0 %v4657_v36 }
 0x793   :  { %3894 = vmatmul.mubr.msk.f32.vlgmr.msra.gmra.mrb[28].mxu0 %vm237_vm2, %v3030_v47 }
 0x794   :  { %3993 = vmatpush3.bf16.msra.mxu0 %v4657_v36 }
 0x795   :  { %3995 = vmatprep.subr.bf16.mxu0 %v4667_v39 }
 0x798   :  { %3997 = vmatpush3.bf16.msra.mxu0 %v4667_v39 }
 0x7db   :  { %v1935_v48 = vpop.f32.mrb[24].mxu1 }
 0x7dc   :  { %v3825_v49 = vpop.f32.mrb[25].mxu1  ;;  %v1939_v50 = vsel %vm237_vm2, %v1935_v48, -inf }
 0x7dd   :  { %1940 = vmax.xlane.f32.xlu1 %v1939_v50 }
 0x84e   :  { %v2100_v51 = vpop.f32.mrb[16].mxu0 }
 0x84f   :  { %v3835_v52 = vpop.f32.mrb[17].mxu0  ;;  %v2104_v0 = vsel %vm237_vm2, %v2100_v51, -inf }
 0x850   :  { %2105 = vmax.xlane.f32.xlu0 %v2104_v0 }
 0x852   :  { %v2265_v1 = vpop.f32.mrb[18].mxu0 }
 0x853   :  { %v3845_v53 = vpop.f32.mrb[19].mxu0  ;;  %v2269_v54 = vsel %vm237_vm2, %v2265_v1, -inf }
 0x854   :  { %2270 = vmax.xlane.f32.xlu0 %v2269_v54 }
 0x856   :  { %v2430_v36 = vpop.f32.mrb[20].mxu0 }
 0x857   :  { %v3855_v55 = vpop.f32.mrb[21].mxu0  ;;  %v2434_v2 = vsel %vm237_vm2, %v2430_v36, -inf }
 0x858   :  { %2435 = vmax.xlane.f32.xlu1 %v2434_v2 }
 0x85a   :  { %v2608_v39 = vpop.f32.mrb[22].mxu0 }
 0x85b   :  { %v3865_v4 = vpop.f32.mrb[23].mxu0  ;;  %v2612_v56 = vsel %vm237_vm2, %v2608_v39, -inf }
 0x85c   :  { %2613 = vmax.xlane.f32.xlu0 %v2612_v56 }
 0x85e   :  { %v2773_v57 = vpop.f32.mrb[24].mxu0 }
 0x85f   :  { %v3875_v58 = vpop.f32.mrb[25].mxu0  ;;  %v2777_v13 = vsel %vm237_vm2, %v2773_v57, -inf }
 0x860   :  { %2778 = vmax.xlane.f32.xlu1 %v2777_v13 }
 0x862   :  { %v2938_v59 = vpop.f32.mrb[26].mxu0 }
 0x863   :  { %v3885_v60 = vpop.f32.mrb[27].mxu0  ;;  %v2942_v61 = vsel %vm237_vm2, %v2938_v59, -inf }
 0x864   :  { %2943 = vmax.xlane.f32.xlu0 %v2942_v61 }
 0x866   :  { %v3103_v62 = vpop.f32.mrb[28].mxu0 }
 0x867   :  { %v3895_v63 = vpop.f32.mrb[29].mxu0  ;;  %v3107_v15 = vsel %vm237_vm2, %v3103_v62, -inf }
 0x86a   :  { %v1941_v10 = vpop.xlane.xlu1 %1940 }
 0x86b   :  { %v1942_v11 = vsub.f32 %v1935_v48, %v1941_v10 }
 0x86d   :  { %v1943_v14 = vmul.f32 1.442695, %v1942_v11 }
 0x86f   :  { %4103 = vpow2.f32 %v1943_v14 }
 0x871   :  { %2280 = vrot.lane.b32.xlu1 %v4731_v28, %s4286_s7 }
 0x879   :  { %v4104_v6 = vpop.eup %4103 }
 0x87a   :  { %2115 = vrot.lane.b32.xlu0 %v4731_v28, %s4287_s28  ;;  %v1945_v16 = vsel %vm237_vm2, %v4104_v6, 0.0 }
 0x895   :  { %3108 = vmax.xlane.f32.xlu1 %v3107_v15 }
 0x899   :  { %1946 = vadd.xlane.f32.xlu0 %v1945_v16 }
 0x8a6   :  { %2445 = vrot.lane.b32.xlu1 %v4731_v28, %s4288_s4 }
 0x8dd   :  { %v2106_v17 = vpop.xlane.xlu0 %2105 }
 0x8de   :  { %v2107_v18 = vsub.f32 %v2100_v51, %v2106_v17 }
 0x8e0   :  { %v2108_v19 = vmul.f32 1.442695, %v2107_v18 }
 0x8e1   :  { %v2271_v20 = vpop.xlane.xlu0 %2270 }
 0x8e2   :  { %4105 = vpow2.f32 %v2108_v19  ;;  %v2272_v21 = vsub.f32 %v2265_v1, %v2271_v20 }
 0x8e4   :  { %v2273_v22 = vmul.f32 1.442695, %v2272_v21 }
 0x8e5   :  { %v2436_v5 = vpop.xlane.xlu1 %2435 }
 0x8e6   :  { %4107 = vpow2.f32 %v2273_v22  ;;  %v2437_v27 = vsub.f32 %v2430_v36, %v2436_v5 }
 0x8e8   :  { %v2438_v32 = vmul.f32 1.442695, %v2437_v27 }
 0x8e9   :  { %v2614_v28 = vpop.xlane.xlu0 %2613 }
 0x8ea   :  { %v2615_v31 = vsub.f32 %v2608_v39, %v2614_v28  ;;  %4109 = vpow2.f32 %v2438_v32 }
 0x8ec   :  { %v4106_v23 = vpop.eup %4105  ;;  %v2616_v35 = vmul.f32 1.442695, %v2615_v31 }
 0x8ed   :  { %v2110_v12 = vsel %vm237_vm2, %v4106_v23, 0.0  ;;  %v2779_v30 = vpop.xlane.xlu1 %2778 }
 0x8ee   :  { %2111 = vadd.xlane.f32.xlu1 %v2110_v12  ;;  %v2780_v33 = vsub.f32 %v2773_v57, %v2779_v30  ;;  %4111 = vpow2.f32 %v2616_v35 }
 0x8f0   :  { %v4817_v24 = vpop.eup %4107  ;;  %v2781_v37 = vmul.f32 1.442695, %v2780_v33 }
 0x8f1   :  { %v2275_v7 = vsel %vm237_vm2, %v4817_v24, 0.0  ;;  %v2944_v34 = vpop.xlane.xlu0 %2943  ;;  %v2281_v41 = vpop.permute.xlu1 %2280 }
 0x8f2   :  { %2276 = vadd.xlane.f32.xlu0 %v2275_v7  ;;  %v2945_v38 = vsub.f32 %v2938_v59, %v2944_v34  ;;  %4113 = vpow2.f32 %v2781_v37 }
 0x8f4   :  { %v2946_v40 = vmul.f32 1.442695, %v2945_v38  ;;  %v4110_v42 = vpop.eup %4109 }
 0x8f5   :  { %v2116_v44 = vpop.permute.xlu0 %2115  ;;  %v2440_v45 = vsel %vm237_vm2, %v4110_v42, 0.0 }
 0x8f6   :  { %4115 = vpow2.f32 %v2946_v40 }
 0x8f8   :  { %v4112_v43 = vpop.eup %4111 }
 0x8f9   :  { %v2618_v50 = vsel %vm237_vm2, %v4112_v43, 0.0 }
 0x8fc   :  { %v4826_v46 = vpop.eup %4113 }
 0x8fd   :  { %v2783_v51 = vsel %vm237_vm2, %v4826_v46, 0.0 }
 0x8ff   :  { %2623 = vrot.lane.b32.xlu1 %v4740_v29, %s4285_s14  ;;  %s3493_s14 = sshll.u32 %s4297_s30, 4  ;;  %s3494_s14 = int_to_ptr.vmem [resolvable:$true] %s3493_s14 }
 0x900   :  { %v4831_v52 = vpop.eup %4115  ;;  %p4250_p13 = scmp.lt.s32.totalorder %s3494_s14, %s3494_s14 }
 0x901   :  { %v2948_v0 = vsel %vm237_vm2, %v4831_v52, 0.0 }
 0x908   :  { %2788 = vrot.lane.b32.xlu0 %v4740_v29, %s4287_s28 }
 0x922   :  { %v3109_v9 = vpop.xlane.xlu1 %3108 }
 0x923   :  { %v3110_v47 = vsub.f32 %v3103_v62, %v3109_v9  ;;  %2441 = vadd.xlane.f32.xlu1 %v2440_v45 }
 0x925   :  { %v3111_v48 = vmul.f32 1.442695, %v3110_v47 }
 0x926   :  { %v1947_v49 = vpop.xlane.xlu0 %1946  ;;  %v2446_v55 = vpop.permute.xlu1 %2445 }
 0x927   :  { %4117 = vpow2.f32 %v3111_v48  ;;  %2619 = vadd.xlane.f32.xlu0 %v2618_v50  ;;  %2784 = vadd.xlane.f32.xlu1 %v2783_v51  ;;  %v124_v51 = vld [vmem:[#allocation8] sm:$0xff] }
 0x928   :  { %4119 = vrcp.f32 %v1947_v49 }
 0x92b   :  { %2949 = vadd.xlane.f32.xlu0 %v2948_v0 }
 0x931   :  { %v4835_v1 = vpop.eup %4117 }
 0x932   :  { %v4120_v53 = vpop.eup %4119  ;;  %v3113_v54 = vsel %vm237_vm2, %v4835_v1, 0.0 }
 0x933   :  { %v1949_v36 = vmul.f32 %v4120_v53, %v4104_v6  ;;  %3114 = vadd.xlane.f32.xlu0 %v3113_v54  ;;  %v127_v53 = vld [vmem:[#allocation8 + $0x18] sm:$0xff] }
 0x935   :  { %3829 = vmatmul.mubr.msk.f32.vlgmr.msra.gmra.mrb[26].mxu1 %vm237_vm2, %v1949_v36  ;;  %v129_v36 = vld [vmem:[%s4996_s9] sm:$0xff] }
 0x936   :  { %3837 = vmatpush3.msra.mxu1 %v2116_v44  ;;  %3838 = vmatprep.mubr.msk.f32.mxu1 %vm4283_vm1, %v4282_v8 }
 0x937   :  { %3846 = vmatprep.subr.mxu1 %v4282_v8 }
 0x938   :  { %2953 = vrot.lane.b32.xlu1 %v4740_v29, %s4286_s7 }
 0x949   :  { %3118 = vrot.lane.b32.xlu0 %v4740_v29, %s4288_s4 }
 0x97b   :  { %v2112_v2 = vpop.xlane.xlu1 %2111 }
 0x97c   :  { %4121 = vrcp.f32 %v2112_v2  ;;  %v131_v2 = vld [vmem:[%s4996_s9 + $0x10] sm:$0xff] }
 0x97f   :  { %v2277_v39 = vpop.xlane.xlu0 %2276  ;;  %v2624_v29 = vpop.permute.xlu1 %2623 }
 0x980   :  { %4123 = vrcp.f32 %v2277_v39 }
 0x983   :  { %v2789_v13 = vpop.permute.xlu0 %2788 }
 0x986   :  { %v4122_v4 = vpop.eup %4121 }
 0x987   :  { %v2114_v56 = vmul.f32 %v4122_v4, %v4106_v23  ;;  %v132_v4 = vld [vmem:[%s4996_s9 + $0x18] sm:$0xff] }
 0x989   :  { %3839 = vmatmul.mubr.msk.f32.vlgmr.msra.gmra.mrb[28].mxu1 %vm237_vm2, %v2114_v56  ;;  %v4010_v56 = vpack.c.bf16 %v132_v4, %v131_v2 }
 0x98a   :  { %v4124_v57 = vpop.eup %4123  ;;  %3847 = vmatpush3.msra.mxu1 %v2281_v41  ;;  %3848 = vmatprep.mubr.msk.f32.mxu1 %vm4283_vm1, %v4282_v8 }
 0x98b   :  { %v2279_v58 = vmul.f32 %v4124_v57, %v4817_v24  ;;  %3856 = vmatprep.subr.mxu1 %v4282_v8  ;;  %v133_v57 = vld [vmem:[%s4996_s9 + $0x20] sm:$0xff] }
 0x98d   :  { %3849 = vmatmul.mubr.msk.f32.vlgmr.msra.gmra.mrb[30].mxu1 %vm237_vm2, %v2279_v58  ;;  %v134_v58 = vld [vmem:[%s4996_s9 + $0x28] sm:$0xff] }
 0x98e   :  { %3857 = vmatpush3.msra.mxu1 %v2446_v55  ;;  %3858 = vmatprep.mubr.msk.f32.mxu1 %vm4283_vm1, %v4282_v8  ;;  %v130_v55 = vld [vmem:[%s4996_s9 + $0x8] sm:$0xff] }
 0x98f   :  { %3866 = vmatprep.subr.mxu1 %v4282_v8  ;;  %v4006_v39 = vpack.c.bf16 %v130_v55, %v129_v36 }
 0x991   :  { %4007 = vmatprep.subr.bf16.mxu0 %v4006_v39 }
 0x9b0   :  { %v2442_v59 = vpop.xlane.xlu1 %2441 }
 0x9b1   :  { %4125 = vrcp.f32 %v2442_v59  ;;  %v136_v59 = vld [vmem:[%s4996_s9 + $0x38] sm:$0xff] }
 0x9b4   :  { %v2620_v60 = vpop.xlane.xlu0 %2619  ;;  %v2785_v61 = vpop.xlane.xlu1 %2784 }
 0x9b5   :  { %4127 = vrcp.f32 %v2620_v60 }
 0x9b6   :  { %4129 = vrcp.f32 %v2785_v61  ;;  %v137_v61 = vld [vmem:[%s4996_s9 + $0x40] sm:$0xff] }
 0x9b8   :  { %v2950_v62 = vpop.xlane.xlu0 %2949  ;;  %v2954_v18 = vpop.permute.xlu1 %2953 }
 0x9b9   :  { %4131 = vrcp.f32 %v2950_v62  ;;  %v138_v62 = vld [vmem:[%s4996_s9 + $0x48] sm:$0xff] }
 0x9bb   :  { %v4126_v63 = vpop.eup %4125 }
 0x9bc   :  { %v2444_v10 = vmul.f32 %v4126_v63, %v4110_v42  ;;  %v4022_v63 = vpack.c.bf16 %v138_v62, %v137_v61 }
 0x9be   :  { %3859 = vmatmul.mubr.msk.f32.vlgmr.msra.gmra.mrb[32].mxu1 %vm237_vm2, %v2444_v10  ;;  %v139_v10 = vld [vmem:[%s4996_s9 + $0x50] sm:$0xff] }
 0x9bf   :  { %v4128_v11 = vpop.eup %4127  ;;  %3867 = vmatpush3.msra.mxu1 %v2624_v29  ;;  %3868 = vmatprep.mubr.msk.f32.mxu1 %vm4283_vm1, %v4282_v8  ;;  %v4014_v29 = vpack.c.bf16 %v134_v58, %v133_v57 }
 0x9c0   :  { %v2622_v14 = vmul.f32 %v4128_v11, %v4112_v43  ;;  %v3115_v15 = vpop.xlane.xlu0 %3114  ;;  %3876 = vmatprep.subr.mxu1 %v4282_v8  ;;  %v4130_v6 = vpop.eup %4129  ;;  %v140_v11 = vld [vmem:[%s4996_s9 + $0x58] sm:$0xff] }
 0x9c1   :  { %4133 = vrcp.f32 %v3115_v15  ;;  %v2787_v16 = vmul.f32 %v4130_v6, %v4826_v46  ;;  %v141_v15 = vld [vmem:[%s4996_s9 + $0x60] sm:$0xff]  ;;  %v142_v6 = vld [vmem:[%s4996_s9 + $0x68] sm:$0xff] }
 0x9c2   :  { %3869 = vmatmul.mubr.msk.f32.vlgmr.msra.gmra.mrb[34].mxu1 %vm237_vm2, %v2622_v14  ;;  %v4026_v14 = vpack.c.bf16 %v140_v11, %v139_v10 }
 0x9c3   :  { %3877 = vmatpush3.msra.mxu1 %v2789_v13  ;;  %3878 = vmatprep.mubr.msk.f32.mxu1 %vm4283_vm1, %v4282_v8  ;;  %v4132_v17 = vpop.eup %4131  ;;  %v135_v13 = vld [vmem:[%s4996_s9 + $0x30] sm:$0xff] }
 0x9c4   :  { %3886 = vmatprep.subr.mxu1 %v4282_v8  ;;  %v2952_v19 = vmul.f32 %v4132_v17, %v4831_v52  ;;  %v3119_v20 = vpop.permute.xlu0 %3118  ;;  %v125_v52 = vld [vmem:[#allocation8 + $0x8] sm:$0xff]  ;;  %v4018_v60 = vpack.c.bf16 %v136_v59, %v135_v13 }
 0x9c5   :  { %v3998_v0 = vpack.c.bf16 %v125_v52, %v124_v51  ;;  %v3577_v51 = vld [vmem:[%s4999_s12 + $0x20] sm:$0xff] }
 0x9c6   :  { %3879 = vmatmul.mubr.msk.f32.vlgmr.msra.gmra.mrb[36].mxu1 %vm237_vm2, %v2787_v16  ;;  %v4030_v16 = vpack.c.bf16 %v142_v6, %v141_v15 }
 0x9c7   :  { %3887 = vmatpush3.msra.mxu1 %v2954_v18  ;;  %3888 = vmatprep.mubr.msk.f32.mxu1 %vm4283_vm1, %v4282_v8 }
 0x9c8   :  { %3896 = vmatprep.subr.mxu1 %v4282_v8 }
 0x9ca   :  { %3889 = vmatmul.mubr.msk.f32.vlgmr.msra.gmra.mrb[38].mxu1 %vm237_vm2, %v2952_v19 }
 0x9cb   :  { %v4134_v21 = vpop.eup %4133  ;;  %3897 = vmatpush3.msra.mxu1 %v3119_v20  ;;  %3898 = vmatprep.mubr.msk.f32.mxu1 %vm4283_vm1, %v4282_v8  ;;  %v3568_v20 = vld [vmem:[%s4998_s11 + $0x18] sm:$0xff] }
 0x9cc   :  { %v3117_v22 = vmul.f32 %v4134_v21, %v4835_v1  ;;  %3999 = vmatprep.subr.bf16.mxu1 %v3998_v0  ;;  %v126_v1 = vld [vmem:[#allocation8 + $0x10] sm:$0xff] }
 0x9cd   :  { %v4002_v54 = vpack.c.bf16 %v127_v53, %v126_v1 }
 0x9ce   :  { %3899 = vmatmul.mubr.msk.f32.vlgmr.msra.gmra.mrb[40].mxu1 %vm237_vm2, %v3117_v22 }
 0x9cf   :  { %4001 = vmatpush3.bf16.msra.mxu1 %v3998_v0 }
 0x9d0   :  { %4003 = vmatprep.subr.bf16.mxu1 %v4002_v54 }
 0x9d3   :  { %4005 = vmatpush3.bf16.msra.mxu1 %v4002_v54 }
 0xa08   :  { %v2022_v23 = vpop.f32.mrb[26].mxu1 }
 0xa09   :  { %v3830_v12 = vpop.f32.mrb[27].mxu1 }
 0xa5c   :  { %v2187_v24 = vpop.f32.mrb[28].mxu1 }
 0xa5d   :  { %2522 = vrot.lane.b32.xlu1 %v2187_v24, %s4278_s21  ;;  %v3840_v7 = vpop.f32.mrb[29].mxu1 }
 0xa5e   :  { %v3569_v7 = vld [vmem:[%s4999_s12 + $0x10] sm:$0xff] }
 0xa60   :  { %v2352_v5 = vpop.f32.mrb[30].mxu1 }
 0xa61   :  { %2526 = vrot.lane.b32.xlu0 %v2352_v5, %s4295_s17  ;;  %v3850_v27 = vpop.f32.mrb[31].mxu1  ;;  %v3570_v5 = vld [vmem:[%s4999_s12 + $0x18] sm:$0xff] }
 0xa91   :  { %v2517_v28 = vpop.f32.mrb[32].mxu1 }
 0xa92   :  { %2530 = vrot.lane.b32.xlu0 %v2517_v28, %s4296_s19  ;;  %v3860_v30 = vpop.f32.mrb[33].mxu1 }
 0xa95   :  { %v2695_v31 = vpop.f32.mrb[34].mxu1 }
 0xa96   :  { %v3870_v8 = vpop.f32.mrb[35].mxu1 }
 0xa99   :  { %v2860_v32 = vpop.f32.mrb[36].mxu1 }
 0xa9a   :  { %3195 = vrot.lane.b32.xlu1 %v2860_v32, %s4278_s21  ;;  %v3880_v33 = vpop.f32.mrb[37].mxu1 }
 0xa9d   :  { %v3025_v34 = vpop.f32.mrb[38].mxu1 }
 0xa9e   :  { %3199 = vrot.lane.b32.xlu1 %v3025_v34, %s4295_s17  ;;  %v3890_v35 = vpop.f32.mrb[39].mxu1 }
 0xaa1   :  { %v3190_v37 = vpop.f32.mrb[40].mxu1 }
 0xaa2   :  { %3203 = vrot.lane.b32.xlu0 %v3190_v37, %s4296_s19  ;;  %v3900_v38 = vpop.f32.mrb[41].mxu1 }
 0xaa3   :  { %v3574_v38 = vld [vmem:[%s4997_s10] ss:$0 sm:$0xff] }
 0xacf   :  { %v2523_v40 = vpop.permute.xlu1 %2522 }
 0xad0   :  { %v2533_v42 = vsel %vm237_vm2, %v2022_v23, %v2523_v40  ;;  %v3567_v23 = vld [vmem:[%s4998_s11 + $0x10] sm:$0xff] }
 0xad3   :  { %v2527_v41 = vpop.permute.xlu0 %2526 }
 0xad4   :  { %v2534_v43 = vsel %vm907_vm3, %v2533_v42, %v2527_v41 }
 0xb04   :  { %v2531_v44 = vpop.permute.xlu0 %2530 }
 0xb05   :  { %v2535_v9 = vsel %vm909_vm4, %v2534_v43, %v2531_v44 }
 0xb06   :  { %3909 = vmatprep.mubr.msk.f32.mxu0 %vm152_vm0, %v2535_v9  ;;  %v3576_v9 = vld [vmem:[%s4998_s11 + $0x28] sm:$0xff] }
 0xb0c   :  { %v3196_v45 = vpop.permute.xlu1 %3195 }
 0xb0d   :  { %v3206_v47 = vsel %vm237_vm2, %v2695_v31, %v3196_v45  ;;  %v3571_v31 = vld [vmem:[#allocation10] ss:$0 sm:$0xff] }
 0xb10   :  { %v3200_v46 = vpop.permute.xlu1 %3199 }
 0xb11   :  { %v3207_v48 = vsel %vm907_vm3, %v3206_v47, %v3200_v46  ;;  %v3575_v47 = vld [vmem:[%s4998_s11 + $0x20] sm:$0xff]  ;;  %s4245_s11 = scalar_lea.vmem %s3494_s14, 256 }
 0xb12   :  { %p4246_p12 = scmp.ne.s32.totalorder %s3494_s14, %s4245_s11  ;;  %p4251_p0 = scmp.lt.s32.totalorder %s4245_s11, %s4245_s11 }
 0xb14   :  { %v3204_v49 = vpop.permute.xlu0 %3203  ;;  %p4252_p1 = por %p4251_p0, %p4250_p13 }
 0xb15   :  { %v3208_v50 = vsel %vm909_vm4, %v3207_v48, %v3204_v49  ;;  %v3578_v49 = vld [vmem:[%s4999_s12 + $0x28] sm:$0xff] }
 0xb16   :  { %3910 = vmatmul.mubr.msk.f32.vlgmr.msra.gmra.mrb[30].mxu0 %vm152_vm0, %v3208_v50  ;;  %p4253_p2 = pnand %p4252_p1, %p4246_p12 }
 0xb17   :  { %4009 = vmatpush3.bf16.msra.mxu0 %v4006_v39 }
 0xb18   :  { %4011 = vmatprep.subr.bf16.mxu0 %v4010_v56 }
 0xb1b   :  { %4013 = vmatpush3.bf16.msra.mxu0 %v4010_v56 }
 0xb1c   :  { %4015 = vmatprep.subr.bf16.mxu0 %v4014_v29 }
 0xb1f   :  { %4017 = vmatpush3.bf16.msra.mxu0 %v4014_v29 }
 0xb20   :  { %4019 = vmatprep.subr.bf16.mxu0 %v4018_v60 }
 0xb23   :  { %4021 = vmatpush3.bf16.msra.mxu0 %v4018_v60 }
 0xb24   :  { %4023 = vmatprep.subr.bf16.mxu0 %v4022_v63 }
 0xb27   :  { %4025 = vmatpush3.bf16.msra.mxu0 %v4022_v63 }
 0xb28   :  { %4027 = vmatprep.subr.bf16.mxu0 %v4026_v14 }
 0xb2b   :  { %4029 = vmatpush3.bf16.msra.mxu0 %v4026_v14 }
 0xb2c   :  { %4031 = vmatprep.subr.bf16.mxu0 %v4030_v16 }
 0xb2f   :  { %4033 = vmatpush3.bf16.msra.mxu0 %v4030_v16 }
 0xbe9   :  { %v3911_v17 = vpop.f32.mrb[30].mxu0 }
 0xbea   :  { %v3287_v18 = vadd.f32 %v3911_v17, %v4703_v3  ;;  %v3281_v19 = vpop.f32.mrb[31].mxu0 }
 0xbeb   :  { %v3282_v21 = vadd.f32 %v4703_v3, %v3281_v19 }
 0xbec   :  { %v3291_v22 = vadd.f32 %v3287_v18, %v4723_v26  ;;  %v144_v26 = vld [vmem:[%s4996_s9 + $0x78] sm:$0xff] }
 0xbed   :  { %v3290_v12 = vadd.f32 %v3282_v21, %v4721_v25  ;;  %v143_v25 = vld [vmem:[%s4996_s9 + $0x70] sm:$0xff] }
 0xbee   :  { %v3296_v24 = vmul.f32 %v3568_v20, %v3291_v22  ;;  %v4034_v30 = vpack.c.bf16 %v144_v26, %v143_v25 }
 0xbef   :  { %v3295_v27 = vmul.f32 %v3567_v23, %v3290_v12 }
 0xbf0   :  { %v3301_v3 = vadd.f32 %v3570_v5, %v3296_v24  ;;  %4035 = vmatprep.subr.bf16.mxu0 %v4034_v30 }
 0xbf1   :  { %v3300_v28 = vadd.f32 %v3569_v7, %v3295_v27  ;;  %4037 = vmatpush3.bf16.msra.mxu0 %v4034_v30 }
 0xbf3   :  { %3920 = vmatprep.mubr.msk.f32.mxu1 %vm152_vm0, %v3300_v28 }
 0xbf4   :  { %3921 = vmatmul.mubr.msk.f32.vlgmr.msra.gmra.mrb[42].mxu1 %vm152_vm0, %v3301_v3 }
 0xcc7   :  { %v3922_v8 = vpop.f32.mrb[42].mxu1 }
 0xcc8   :  { %v3386_v32 = vadd.f32 %v3922_v8, %v3571_v31  ;;  %v3380_v33 = vpop.f32.mrb[43].mxu1 }
 0xcc9   :  { %v3381_v34 = vadd.f32 %v3571_v31, %v3380_v33 }
 0xcca   :  { %v3390_v37 = vmax.f32 %v3386_v32, 0.0 }
 0xccb   :  { %v3389_v35 = vmax.f32 %v3381_v34, 0.0 }
 0xccd   :  { %3955 = vmatprep.mubr.f32.mxu0 %v3389_v35 }
 0xcce   :  { %3956 = vmatmul.mubr.f32.vlgmr.msra.gmra.mrb[32].mxu0 %v3390_v37 }
 0xda1   :  { %v3957_v40 = vpop.f32.mrb[32].mxu0 }
 0xda2   :  { %v3469_v41 = vadd.f32 %v3957_v40, %v3574_v38  ;;  %v3463_v42 = vpop.f32.mrb[33].mxu0 }
 0xda3   :  { %v3464_v43 = vadd.f32 %v3574_v38, %v3463_v42 }
 0xda4   :  { %v3473_v44 = vadd.f32 %v3469_v41, %v3301_v3 }
 0xda5   :  { %v3472_v45 = vadd.f32 %v3464_v43, %v3300_v28 }
 0xda6   :  { %v3475_v46 = vadd.f32 %v3473_v44, %v3301_v3 }
 0xda7   :  { %v3474_v48 = vadd.f32 %v3472_v45, %v3300_v28 }
 0xda8   :  { %v3480_v50 = vmul.f32 %v3576_v9, %v3475_v46 }
 0xda9   :  { %v3479_v52 = vmul.f32 %v3575_v47, %v3474_v48 }
 0xdaa   :  { %v3485_v0 = vadd.f32 %v3578_v49, %v3480_v50 }
 0xdab   :  { %v3484_v1 = vadd.f32 %v3577_v51, %v3479_v52 }
 0xdac   :  { %3487 = vst.msk [vmem:[#allocation11 + $0x8] sm:$0xff] %vm152_vm0, %v3485_v0 }
 0xdad   :  { %3486 = vst.msk [vmem:[#allocation11] sm:$0xff] %vm152_vm0, %v3484_v1 }
 0xdae   :  { %4256 = shalt.err (!%p4253_p2)
}
 0xdaf   :  { %s4257_s12 = scalar_lea.hbm %s5000_s13, 256 }
 0xdb0   :  { %p4258_p3 = scmp.ne.s32.totalorder %s5000_s13, %s4257_s12  ;;  %p4261_p4 = scmp.lt.u32.totalorder %s4257_s12, %s5000_s13 }
 0xdb2   :  { %p4263_p5 = pnand %p4261_p4, %p4258_p3 }
 0xdb4   :  { %4266 = shalt.err (!%p4263_p5)
}
 0xdb5   :  { %3499 = dma.vmem_to_hbm [thread:$0]  %s3494_s14, 256, %s5000_s13, [#allocation4], %s4277_s20, %s4277_s20, %s4278_s21  }
 0xdb6   :  { %4273 = dma.done.wait [#allocation4], 256  }
 0xdb7   :  { %4274 = vsyncadd [#allocation4], 4294967040 }
 0xdb8   :  { %3503 = vsyncpa [#allocation3], 1 }
 0xdb9   :  { %3504 = vsyncpa [#allocation6], 1 }
 0xdba   :  { %3505 = vsyncpa [#allocation9], 1 }
 0xdbb   :  { %3506 = vsyncpa [#allocation4], 1 }

</bundles_post_ra>
